<compile_context>
chip_gen: v7x
topology: tpu7x:2x2x1
jax: 0.10.0
libtpu: 0.0.40
codegen_flags: <defaults>
</compile_context>

<pallas_src>
import functools
import math

import jax
import jax.numpy as jnp
from jax.experimental import pallas as pl
from jax.experimental.pallas import tpu as pltpu


def _round_up(v, m):
    return ((v + m - 1) // m) * m


def _cdiv(a, b):
    return -(-a // b)


def _tpu_vmem_capacity_bytes():
    """Best-effort per-core VMEM capacity; conservative fallbacks."""
    try:
        return int(pltpu.get_tpu_info().vmem_capacity_bytes)
    except Exception:
        pass
    try:
        kind = jax.devices()[0].device_kind.lower()
        if "v7" in kind:
            return 64 * 1024 * 1024
    except Exception:
        pass
    return 128 * 1024 * 1024


def vae_forward_kernel(x_ref, eps_ref,
                       w1_ref, w2_ref, w3_ref, w4_ref, w5_ref, w6_ref,
                       bias_ref, recon_ref, mulv_ref, *, z_pad, boffs):
    """One batch tile: 6 matmuls (bf16 MXU operands, f32 acc) + reparam."""
    (o1, o2, o3, o4, o5, o6) = boffs

    def bias(off_width):
        off, width = off_width
        return bias_ref[:, off:off + width]          # static, 128-aligned slice

    x = x_ref[...]                                   # bf16 [TB, x_pad]

    # ---- encoder ----
    h = jnp.dot(x, w1_ref[...], preferred_element_type=jnp.float32)
    h = jnp.maximum(h + bias(o1), 0.0).astype(jnp.bfloat16)
    h = jnp.dot(h, w2_ref[...], preferred_element_type=jnp.float32)
    h = jnp.maximum(h + bias(o2), 0.0).astype(jnp.bfloat16)

    # Fused mu / log_var head: [TB, 2*z_pad] = [mu | log_var] (f32).
    head = jnp.dot(h, w3_ref[...], preferred_element_type=jnp.float32) + bias(o3)
    mu = head[:, :z_pad]
    log_var = head[:, z_pad:]

    # ---- sampling (reparameterization): z = eps * exp(0.5*log_var) + mu ----
    std = jnp.exp(0.5 * log_var)
    z = (eps_ref[...].astype(jnp.float32) * std + mu).astype(jnp.bfloat16)

    # ---- decoder ----
    d = jnp.dot(z, w4_ref[...], preferred_element_type=jnp.float32)
    d = jnp.maximum(d + bias(o4), 0.0).astype(jnp.bfloat16)
    d = jnp.dot(d, w5_ref[...], preferred_element_type=jnp.float32)
    d = jnp.maximum(d + bias(o5), 0.0).astype(jnp.bfloat16)
    logits = jnp.dot(d, w6_ref[...], preferred_element_type=jnp.float32) + bias(o6)

    recon_ref[...] = jax.nn.sigmoid(logits).astype(recon_ref.dtype)
    mulv_ref[...] = head


def prepare_vae_params(params):
    """Pad / cast / pack the weights ONCE (hoisted out of the per-call path)."""
    (w1, b1, w2, b2, w31, b31, w32, b32, w4, b4, w5, b5, w6, b6) = params
    x_dim, h1 = w1.shape
    h2 = w2.shape[1]
    z_dim = w31.shape[1]

    x_pad = _round_up(x_dim, 128)
    h1_pad = _round_up(h1, 128)
    h2_pad = _round_up(h2, 128)
    z_pad = _round_up(z_dim, 128)

    def pad_w(w, rin, cout):
        w = jnp.asarray(w, jnp.float32)
        return jnp.zeros((rin, cout), jnp.float32).at[:w.shape[0], :w.shape[1]].set(w)

    def pad_b(b, cout):
        b2 = jnp.asarray(b, jnp.float32).reshape(1, -1)
        return jnp.zeros((1, cout), jnp.float32).at[:, :b2.shape[1]].set(b2)

    # bf16 weights (MXU operands); f32 biases (added post-accumulation).
    w1p = pad_w(w1, x_pad, h1_pad).astype(jnp.bfloat16)
    w2p = pad_w(w2, h1_pad, h2_pad).astype(jnp.bfloat16)
    w3p = jnp.concatenate(                               # fused [mu | log_var] head
        [pad_w(w31, h2_pad, z_pad), pad_w(w32, h2_pad, z_pad)], axis=1
    ).astype(jnp.bfloat16)
    w4p = pad_w(w4, z_pad, h2_pad).astype(jnp.bfloat16)
    w5p = pad_w(w5, h2_pad, h1_pad).astype(jnp.bfloat16)
    w6p = pad_w(w6, h1_pad, x_pad).astype(jnp.bfloat16)

    # All 6 biases packed into a single resident [1, sum(widths)] f32 array.
    b_list = [pad_b(b1, h1_pad), pad_b(b2, h2_pad),
              jnp.concatenate([pad_b(b31, z_pad), pad_b(b32, z_pad)], axis=1),
              pad_b(b4, h2_pad), pad_b(b5, h1_pad), pad_b(b6, x_pad)]
    bias_pack = jnp.concatenate(b_list, axis=1)
    boffs, cur = [], 0
    for b_ in b_list:
        boffs.append((cur, int(b_.shape[1])))
        cur += int(b_.shape[1])

    return {
        "weights": tuple(jax.device_put(w) for w in (w1p, w2p, w3p, w4p, w5p, w6p)),
        "bias_pack": jax.device_put(bias_pack),
        "boffs": tuple(boffs),
        "dims": (x_dim, h1, h2, z_dim),
        "pads": (x_pad, h1_pad, h2_pad, z_pad),
    }


def vae_forward(x, eps, prepared, *, batch_tile=None):
    """x: any shape flattening to [B, x_dim]; eps: [B, z_dim] N(0,1) noise."""
    x_dim, h1, h2, z_dim = prepared["dims"]
    x_pad, h1_pad, h2_pad, z_pad = prepared["pads"]
    weights = prepared["weights"]
    bias_pack = prepared["bias_pack"]
    boffs = prepared["boffs"]

    x2d = x.reshape(-1, x_dim)                    # mirrors x.view(-1, x_dim)
    B = x2d.shape[0]
    if eps.shape != (B, z_dim):
        raise ValueError(f"eps shape {eps.shape} does not match ({B}, {z_dim})")

    # ---- per-generation batch-tile policy ----
    vmem_cap = _tpu_vmem_capacity_bytes()
    tb_max = 256 if vmem_cap <= 64 * 1024 * 1024 else 512   # v7x vs v5e/v6e
    if batch_tile is None:
        # Target >= 4 grid steps when B allows it (pipelining + v7x 2-TC sharding).
        TB = min(tb_max, max(8, _round_up(_cdiv(B, 4), 8)))
    else:
        TB = max(8, min(tb_max, _round_up(batch_tile, 8)))
    Bp = _round_up(B, TB)
    grid = (Bp // TB,)

    # Streamed inputs in bf16 (eps is pure noise; bf16 precision is irrelevant).
    xp = jnp.zeros((Bp, x_pad), jnp.bfloat16).at[:B, :x_dim].set(
        x2d.astype(jnp.bfloat16))
    epsp = jnp.zeros((Bp, z_pad), jnp.bfloat16).at[:B, :z_dim].set(
        eps.astype(jnp.bfloat16))

    resident = tuple(weights) + (bias_pack,)
    inputs = (xp, epsp) + resident

    # ---- cost estimate & per-generation VMEM budget ----
    flops_per_row = 2 * (x_pad * h1_pad + h1_pad * h2_pad + h2_pad * 2 * z_pad
                         + z_pad * h2_pad + h2_pad * h1_pad + h1_pad * x_pad)
    out_bytes = Bp * (x_pad * 2 + 2 * z_pad * 4)
    cost = pl.CostEstimate(
        flops=Bp * flops_per_row,
        transcendentals=Bp * (z_pad + 2 * x_pad),   # exp(std) + exp/recip(sigmoid)
        bytes_accessed=sum(int(a.size) * a.dtype.itemsize for a in inputs)
        + out_bytes,
    )
    weight_bytes = sum(int(a.size) * a.dtype.itemsize for a in resident)
    stream_bytes = TB * (x_pad * 2 + z_pad * 2 + x_pad * 2 + 2 * z_pad * 4)
    vmem_limit = min(int(0.75 * vmem_cap),          # ~48 MiB v7x, ~96 MiB v5e/v6e
                     max(32 * 1024 * 1024,
                         2 * weight_bytes + 2 * stream_bytes + (16 << 20)))

    def batch_spec(feat):
        return pl.BlockSpec((TB, feat), lambda i: (i, 0))

    def build_call(single_buffer_weights):
        if single_buffer_weights:
            def resident_spec(arr):
                # Grid-invariant: one VMEM copy, no double-buffer.
                return pl.BlockSpec(arr.shape, lambda i: (0, 0),
                                    pipeline_mode=pl.Buffered(1))
        else:
            def resident_spec(arr):
                return pl.BlockSpec(arr.shape, lambda i: (0, 0))

        in_specs = [batch_spec(x_pad), batch_spec(z_pad)] + \
                   [resident_spec(a) for a in resident]
        out_shapes = (
            jax.ShapeDtypeStruct((Bp, x_pad), jnp.bfloat16),      # recon (bf16 stream)
            jax.ShapeDtypeStruct((Bp, 2 * z_pad), jnp.float32),   # [mu | log_var]
        )
        out_specs = (batch_spec(x_pad), batch_spec(2 * z_pad))
        return pl.pallas_call(
            functools.partial(vae_forward_kernel, z_pad=z_pad, boffs=boffs),
            out_shape=out_shapes,
            grid=grid,
            in_specs=in_specs,
            out_specs=out_specs,
            compiler_params=pltpu.CompilerParams(
                dimension_semantics=("parallel",),    # v7x: shard batch over 2 TCs
                vmem_limit_bytes=int(vmem_limit)),
            cost_estimate=cost,
        )

    try:
        recon_p, mulv_p = build_call(True)(*inputs)
    except Exception:
        # Fallback if single-buffered resident specs (pl.Buffered(1)) are not
        # supported by this jax/Mosaic build.
        recon_p, mulv_p = build_call(False)(*inputs)

    recon = recon_p[:B, :x_dim]                       # bf16; upcast downstream if needed
    mu = mulv_p[:B, :z_dim]
    log_var = mulv_p[:B, z_pad:z_pad + z_dim]
    return recon, mu, log_var


def init_linear(key, fan_in, fan_out):
    # PyTorch nn.Linear default init: U(-1/sqrt(fan_in), 1/sqrt(fan_in)).
    kw, kb = jax.random.split(key)
    bound = 1.0 / math.sqrt(fan_in)
    w = jax.random.uniform(kw, (fan_in, fan_out), jnp.float32, -bound, bound)
    b = jax.random.uniform(kb, (1, fan_out), jnp.float32, -bound, bound)
    return w, b


if __name__ == "__main__":
    # Small shapes: x is NCHW (2, 1, 8, 8) -> flattened x_dim = 64.
    B, C, H, W = 2, 1, 8, 8
    x_dim, h_dim1, h_dim2, z_dim = C * H * W, 32, 32, 16

    root = jax.random.PRNGKey(0)
    keys = jax.random.split(root, 9)

    w1, b1 = init_linear(keys[0], x_dim, h_dim1)
    w2, b2 = init_linear(keys[1], h_dim1, h_dim2)
    w31, b31 = init_linear(keys[2], h_dim2, z_dim)
    w32, b32 = init_linear(keys[3], h_dim2, z_dim)
    w4, b4 = init_linear(keys[4], z_dim, h_dim2)
    w5, b5 = init_linear(keys[5], h_dim2, h_dim1)
    w6, b6 = init_linear(keys[6], h_dim1, x_dim)
    params = (w1, b1, w2, b2, w31, b31, w32, b32, w4, b4, w5, b5, w6, b6)

    # One-time weight padding / packing (hoisted out of the per-call path).
    prepared = prepare_vae_params(params)

    x = jax.random.normal(keys[7], (B, C, H, W), jnp.float32)
    # eps ~ N(0,1): deterministic stand-in for torch.randn_like(std).
    eps = jax.random.normal(keys[8], (B, z_dim), jnp.float32)

    recon, mu, log_var = vae_forward(x, eps, prepared)
    jax.block_until_ready((recon, mu, log_var))

    # Pure-JAX reference mirroring the kernel's numerics
    # (bf16 MXU operands + bf16-streamed eps, f32 accumulation/elementwise).
    def bdot(a, w):
        return jnp.dot(a.astype(jnp.bfloat16), w.astype(jnp.bfloat16),
                       preferred_element_type=jnp.float32)

    x2d = x.reshape(-1, x_dim).astype(jnp.float32)
    h_ref = jax.nn.relu(bdot(x2d, w1) + b1)
    h_ref = jax.nn.relu(bdot(h_ref, w2) + b2)
    mu_ref = bdot(h_ref, w31) + b31
    lv_ref = bdot(h_ref, w32) + b32
    eps_b = eps.astype(jnp.bfloat16).astype(jnp.float32)
    z_ref = eps_b * jnp.exp(0.5 * lv_ref) + mu_ref
    d_ref = jax.nn.relu(bdot(z_ref, w4) + b4)
    d_ref = jax.nn.relu(bdot(d_ref, w5) + b5)
    recon_ref = jax.nn.sigmoid(bdot(d_ref, w6) + b6)

    assert recon.shape == (B, x_dim)
    assert mu.shape == (B, z_dim) and log_var.shape == (B, z_dim)
    assert jnp.allclose(mu, mu_ref, atol=1e-4, rtol=1e-3)
    assert jnp.allclose(log_var, lv_ref, atol=1e-4, rtol=1e-3)
    # recon is stored as bf16 -> loosen tolerance for the final quantization.
    assert jnp.allclose(recon.astype(jnp.float32), recon_ref, atol=1e-2, rtol=1e-2)

    print("KERNEL_OK")
</pallas_src>

<mosaic_0001>
module attributes {stable_mosaic.version = 11 : i64} {
  func.func @vae_forward_kernel(%arg0: i32, %arg1: memref<8x128xbf16, #tpu.memory_space<vmem>>, %arg2: memref<8x128xbf16, #tpu.memory_space<vmem>>, %arg3: memref<128x128xbf16, #tpu.memory_space<vmem>>, %arg4: memref<128x128xbf16, #tpu.memory_space<vmem>>, %arg5: memref<128x256xbf16, #tpu.memory_space<vmem>>, %arg6: memref<128x128xbf16, #tpu.memory_space<vmem>>, %arg7: memref<128x128xbf16, #tpu.memory_space<vmem>>, %arg8: memref<128x128xbf16, #tpu.memory_space<vmem>>, %arg9: memref<1x896xf32, #tpu.memory_space<vmem>>, %arg10: memref<8x128xbf16, #tpu.memory_space<vmem>>, %arg11: memref<8x256xf32, #tpu.memory_space<vmem>>) attributes {dimension_semantics = [#tpu.dimension_semantics<parallel>], iteration_bounds = array<i64: 1>, scalar_prefetch = 0 : i64, scratch_operands = 0 : i64, tpu.core_type = #tpu.core_type<tc>, window_params = [{transform_indices = @transform_0, window_bounds = array<i64: 8, 128>}, {transform_indices = @transform_1, window_bounds = array<i64: 8, 128>}, {pipeline_mode = #tpu.pipeline_mode<synchronous>, transform_indices = @transform_2, window_bounds = array<i64: 128, 128>}, {pipeline_mode = #tpu.pipeline_mode<synchronous>, transform_indices = @transform_3, window_bounds = array<i64: 128, 128>}, {pipeline_mode = #tpu.pipeline_mode<synchronous>, transform_indices = @transform_4, window_bounds = array<i64: 128, 256>}, {pipeline_mode = #tpu.pipeline_mode<synchronous>, transform_indices = @transform_5, window_bounds = array<i64: 128, 128>}, {pipeline_mode = #tpu.pipeline_mode<synchronous>, transform_indices = @transform_6, window_bounds = array<i64: 128, 128>}, {pipeline_mode = #tpu.pipeline_mode<synchronous>, transform_indices = @transform_7, window_bounds = array<i64: 128, 128>}, {pipeline_mode = #tpu.pipeline_mode<synchronous>, transform_indices = @transform_8, window_bounds = array<i64: 1, 896>}, {transform_indices = @transform_9, window_bounds = array<i64: 8, 128>}, {transform_indices = @transform_10, window_bounds = array<i64: 8, 256>}]} {
    %c0 = arith.constant 0 : index
    %c0_0 = arith.constant 0 : index
    %0 = vector.load %arg1[%c0, %c0_0] : memref<8x128xbf16, #tpu.memory_space<vmem>>, vector<8x128xbf16>
    %c0_1 = arith.constant 0 : index
    %c0_2 = arith.constant 0 : index
    %1 = vector.load %arg3[%c0_1, %c0_2] : memref<128x128xbf16, #tpu.memory_space<vmem>>, vector<128x128xbf16>
    %cst = arith.constant dense<0.000000e+00> : vector<8x128xf32>
    %2 = tpu.matmul %0, %1, %cst {dimension_numbers = #tpu.dot_dimension_numbers<[1], [0], [0], [1], [0, 0, 1, 1], [], []>} : vector<8x128xbf16>, vector<128x128xbf16>, vector<8x128xf32> -> vector<8x128xf32>
    %c0_3 = arith.constant 0 : index
    %c0_4 = arith.constant 0 : index
    %3 = vector.load %arg9[%c0_3, %c0_4] : memref<1x896xf32, #tpu.memory_space<vmem>>, vector<1x128xf32>
    %4 = vector.broadcast %3 : vector<1x128xf32> to vector<8x128xf32>
    %5 = arith.addf %2, %4 : vector<8x128xf32>
    %cst_5 = arith.constant 0.000000e+00 : f32
    %6 = vector.broadcast %cst_5 : f32 to vector<8x128xf32>
    %7 = arith.maximumf %5, %6 : vector<8x128xf32>
    %8 = arith.truncf %7 : vector<8x128xf32> to vector<8x128xbf16>
    %c0_6 = arith.constant 0 : index
    %c0_7 = arith.constant 0 : index
    %9 = vector.load %arg4[%c0_6, %c0_7] : memref<128x128xbf16, #tpu.memory_space<vmem>>, vector<128x128xbf16>
    %cst_8 = arith.constant dense<0.000000e+00> : vector<8x128xf32>
    %10 = tpu.matmul %8, %9, %cst_8 {dimension_numbers = #tpu.dot_dimension_numbers<[1], [0], [0], [1], [0, 0, 1, 1], [], []>} : vector<8x128xbf16>, vector<128x128xbf16>, vector<8x128xf32> -> vector<8x128xf32>
    %c0_9 = arith.constant 0 : index
    %c128 = arith.constant 128 : index
    %11 = vector.load %arg9[%c0_9, %c128] : memref<1x896xf32, #tpu.memory_space<vmem>>, vector<1x128xf32>
    %12 = vector.broadcast %11 : vector<1x128xf32> to vector<8x128xf32>
    %13 = arith.addf %10, %12 : vector<8x128xf32>
    %cst_10 = arith.constant 0.000000e+00 : f32
    %14 = vector.broadcast %cst_10 : f32 to vector<8x128xf32>
    %15 = arith.maximumf %13, %14 : vector<8x128xf32>
    %16 = arith.truncf %15 : vector<8x128xf32> to vector<8x128xbf16>
    %c0_11 = arith.constant 0 : index
    %c0_12 = arith.constant 0 : index
    %17 = vector.load %arg5[%c0_11, %c0_12] : memref<128x256xbf16, #tpu.memory_space<vmem>>, vector<128x256xbf16>
    %cst_13 = arith.constant dense<0.000000e+00> : vector<8x256xf32>
    %18 = tpu.matmul %16, %17, %cst_13 {dimension_numbers = #tpu.dot_dimension_numbers<[1], [0], [0], [1], [0, 0, 1, 1], [], []>} : vector<8x128xbf16>, vector<128x256xbf16>, vector<8x256xf32> -> vector<8x256xf32>
    %c0_14 = arith.constant 0 : index
    %c256 = arith.constant 256 : index
    %19 = vector.load %arg9[%c0_14, %c256] : memref<1x896xf32, #tpu.memory_space<vmem>>, vector<1x256xf32>
    %20 = vector.broadcast %19 : vector<1x256xf32> to vector<8x256xf32>
    %21 = arith.addf %18, %20 : vector<8x256xf32>
    %22 = vector.extract_strided_slice %21 {offsets = [0, 0], sizes = [8, 128], strides = [1, 1]} : vector<8x256xf32> to vector<8x128xf32>
    %23 = vector.extract_strided_slice %21 {offsets = [0, 128], sizes = [8, 128], strides = [1, 1]} : vector<8x256xf32> to vector<8x128xf32>
    %cst_15 = arith.constant 5.000000e-01 : f32
    %24 = vector.broadcast %cst_15 : f32 to vector<8x128xf32>
    %25 = arith.mulf %24, %23 : vector<8x128xf32>
    %26 = math.exp %25 : vector<8x128xf32>
    %c0_16 = arith.constant 0 : index
    %c0_17 = arith.constant 0 : index
    %27 = vector.load %arg2[%c0_16, %c0_17] : memref<8x128xbf16, #tpu.memory_space<vmem>>, vector<8x128xbf16>
    %28 = arith.extf %27 : vector<8x128xbf16> to vector<8x128xf32>
    %29 = arith.mulf %28, %26 : vector<8x128xf32>
    %30 = arith.addf %29, %22 : vector<8x128xf32>
    %31 = arith.truncf %30 : vector<8x128xf32> to vector<8x128xbf16>
    %c0_18 = arith.constant 0 : index
    %c0_19 = arith.constant 0 : index
    %32 = vector.load %arg6[%c0_18, %c0_19] : memref<128x128xbf16, #tpu.memory_space<vmem>>, vector<128x128xbf16>
    %cst_20 = arith.constant dense<0.000000e+00> : vector<8x128xf32>
    %33 = tpu.matmul %31, %32, %cst_20 {dimension_numbers = #tpu.dot_dimension_numbers<[1], [0], [0], [1], [0, 0, 1, 1], [], []>} : vector<8x128xbf16>, vector<128x128xbf16>, vector<8x128xf32> -> vector<8x128xf32>
    %c0_21 = arith.constant 0 : index
    %c512 = arith.constant 512 : index
    %34 = vector.load %arg9[%c0_21, %c512] : memref<1x896xf32, #tpu.memory_space<vmem>>, vector<1x128xf32>
    %35 = vector.broadcast %34 : vector<1x128xf32> to vector<8x128xf32>
    %36 = arith.addf %33, %35 : vector<8x128xf32>
    %cst_22 = arith.constant 0.000000e+00 : f32
    %37 = vector.broadcast %cst_22 : f32 to vector<8x128xf32>
    %38 = arith.maximumf %36, %37 : vector<8x128xf32>
    %39 = arith.truncf %38 : vector<8x128xf32> to vector<8x128xbf16>
    %c0_23 = arith.constant 0 : index
    %c0_24 = arith.constant 0 : index
    %40 = vector.load %arg7[%c0_23, %c0_24] : memref<128x128xbf16, #tpu.memory_space<vmem>>, vector<128x128xbf16>
    %cst_25 = arith.constant dense<0.000000e+00> : vector<8x128xf32>
    %41 = tpu.matmul %39, %40, %cst_25 {dimension_numbers = #tpu.dot_dimension_numbers<[1], [0], [0], [1], [0, 0, 1, 1], [], []>} : vector<8x128xbf16>, vector<128x128xbf16>, vector<8x128xf32> -> vector<8x128xf32>
    %c0_26 = arith.constant 0 : index
    %c640 = arith.constant 640 : index
    %42 = vector.load %arg9[%c0_26, %c640] : memref<1x896xf32, #tpu.memory_space<vmem>>, vector<1x128xf32>
    %43 = vector.broadcast %42 : vector<1x128xf32> to vector<8x128xf32>
    %44 = arith.addf %41, %43 : vector<8x128xf32>
    %cst_27 = arith.constant 0.000000e+00 : f32
    %45 = vector.broadcast %cst_27 : f32 to vector<8x128xf32>
    %46 = arith.maximumf %44, %45 : vector<8x128xf32>
    %47 = arith.truncf %46 : vector<8x128xf32> to vector<8x128xbf16>
    %c0_28 = arith.constant 0 : index
    %c0_29 = arith.constant 0 : index
    %48 = vector.load %arg8[%c0_28, %c0_29] : memref<128x128xbf16, #tpu.memory_space<vmem>>, vector<128x128xbf16>
    %cst_30 = arith.constant dense<0.000000e+00> : vector<8x128xf32>
    %49 = tpu.matmul %47, %48, %cst_30 {dimension_numbers = #tpu.dot_dimension_numbers<[1], [0], [0], [1], [0, 0, 1, 1], [], []>} : vector<8x128xbf16>, vector<128x128xbf16>, vector<8x128xf32> -> vector<8x128xf32>
    %c0_31 = arith.constant 0 : index
    %c768 = arith.constant 768 : index
    %50 = vector.load %arg9[%c0_31, %c768] : memref<1x896xf32, #tpu.memory_space<vmem>>, vector<1x128xf32>
    %51 = vector.broadcast %50 : vector<1x128xf32> to vector<8x128xf32>
    %52 = arith.addf %49, %51 : vector<8x128xf32>
    %53 = arith.negf %52 : vector<8x128xf32>
    %54 = math.exp %53 : vector<8x128xf32>
    %cst_32 = arith.constant 1.000000e+00 : f32
    %55 = vector.broadcast %cst_32 : f32 to vector<8x128xf32>
    %56 = arith.addf %55, %54 : vector<8x128xf32>
    %57 = arith.divf %55, %56 : vector<8x128xf32>
    %58 = arith.truncf %57 : vector<8x128xf32> to vector<8x128xbf16>
    %c0_33 = arith.constant 0 : index
    %c0_34 = arith.constant 0 : index
    %59 = vector.load %arg10[%c0_33, %c0_34] : memref<8x128xbf16, #tpu.memory_space<vmem>>, vector<8x128xbf16>
    tpu.vector_store %arg10[%c0_33, %c0_34], %58 {strides = array<i32>} : memref<8x128xbf16, #tpu.memory_space<vmem>>, vector<8x128xbf16>,
    %c0_35 = arith.constant 0 : index
    %c0_36 = arith.constant 0 : index
    %60 = vector.load %arg11[%c0_35, %c0_36] : memref<8x256xf32, #tpu.memory_space<vmem>>, vector<8x256xf32>
    tpu.vector_store %arg11[%c0_35, %c0_36], %21 {strides = array<i32>} : memref<8x256xf32, #tpu.memory_space<vmem>>, vector<8x256xf32>,
    return
  }
  func.func @transform_0(%arg0: i32) -> (i32, i32) {
    %c0_i32 = arith.constant 0 : i32
    %c0_i32_0 = arith.constant 0 : i32
    return %arg0, %c0_i32 : i32, i32
  }
  func.func @transform_1(%arg0: i32) -> (i32, i32) {
    %c0_i32 = arith.constant 0 : i32
    %c0_i32_0 = arith.constant 0 : i32
    return %arg0, %c0_i32 : i32, i32
  }
  func.func @transform_2(%arg0: i32) -> (i32, i32) {
    %c0_i32 = arith.constant 0 : i32
    %c0_i32_0 = arith.constant 0 : i32
    %c0_i32_1 = arith.constant 0 : i32
    return %c0_i32, %c0_i32_0 : i32, i32
  }
  func.func @transform_3(%arg0: i32) -> (i32, i32) {
    %c0_i32 = arith.constant 0 : i32
    %c0_i32_0 = arith.constant 0 : i32
    %c0_i32_1 = arith.constant 0 : i32
    return %c0_i32, %c0_i32_0 : i32, i32
  }
  func.func @transform_4(%arg0: i32) -> (i32, i32) {
    %c0_i32 = arith.constant 0 : i32
    %c0_i32_0 = arith.constant 0 : i32
    %c0_i32_1 = arith.constant 0 : i32
    return %c0_i32, %c0_i32_0 : i32, i32
  }
  func.func @transform_5(%arg0: i32) -> (i32, i32) {
    %c0_i32 = arith.constant 0 : i32
    %c0_i32_0 = arith.constant 0 : i32
    %c0_i32_1 = arith.constant 0 : i32
    return %c0_i32, %c0_i32_0 : i32, i32
  }
  func.func @transform_6(%arg0: i32) -> (i32, i32) {
    %c0_i32 = arith.constant 0 : i32
    %c0_i32_0 = arith.constant 0 : i32
    %c0_i32_1 = arith.constant 0 : i32
    return %c0_i32, %c0_i32_0 : i32, i32
  }
  func.func @transform_7(%arg0: i32) -> (i32, i32) {
    %c0_i32 = arith.constant 0 : i32
    %c0_i32_0 = arith.constant 0 : i32
    %c0_i32_1 = arith.constant 0 : i32
    return %c0_i32, %c0_i32_0 : i32, i32
  }
  func.func @transform_8(%arg0: i32) -> (i32, i32) {
    %c0_i32 = arith.constant 0 : i32
    %c0_i32_0 = arith.constant 0 : i32
    %c0_i32_1 = arith.constant 0 : i32
    return %c0_i32, %c0_i32_0 : i32, i32
  }
  func.func @transform_9(%arg0: i32) -> (i32, i32) {
    %c0_i32 = arith.constant 0 : i32
    %c0_i32_0 = arith.constant 0 : i32
    return %arg0, %c0_i32 : i32, i32
  }
  func.func @transform_10(%arg0: i32) -> (i32, i32) {
    %c0_i32 = arith.constant 0 : i32
    %c0_i32_0 = arith.constant 0 : i32
    return %arg0, %c0_i32 : i32, i32
  }
}

module attributes {stable_mosaic.version = 11 : i64} {
  func.func @vae_forward_kernel(%arg0: i32, %arg1: memref<8x128xbf16, #tpu.memory_space<vmem>>, %arg2: memref<8x128xbf16, #tpu.memory_space<vmem>>, %arg3: memref<128x128xbf16, #tpu.memory_space<vmem>>, %arg4: memref<128x128xbf16, #tpu.memory_space<vmem>>, %arg5: memref<128x256xbf16, #tpu.memory_space<vmem>>, %arg6: memref<128x128xbf16, #tpu.memory_space<vmem>>, %arg7: memref<128x128xbf16, #tpu.memory_space<vmem>>, %arg8: memref<128x128xbf16, #tpu.memory_space<vmem>>, %arg9: memref<1x896xf32, #tpu.memory_space<vmem>>, %arg10: memref<8x128xbf16, #tpu.memory_space<vmem>>, %arg11: memref<8x256xf32, #tpu.memory_space<vmem>>) attributes {dimension_semantics = [#tpu.dimension_semantics<parallel>], iteration_bounds = array<i64: 1>, scalar_prefetch = 0 : i64, scratch_operands = 0 : i64, tpu.core_type = #tpu.core_type<tc>, window_params = [{transform_indices = @transform_0, window_bounds = array<i64: 8, 128>}, {transform_indices = @transform_1, window_bounds = array<i64: 8, 128>}, {pipeline_mode = #tpu.pipeline_mode<synchronous>, transform_indices = @transform_2, window_bounds = array<i64: 128, 128>}, {pipeline_mode = #tpu.pipeline_mode<synchronous>, transform_indices = @transform_3, window_bounds = array<i64: 128, 128>}, {pipeline_mode = #tpu.pipeline_mode<synchronous>, transform_indices = @transform_4, window_bounds = array<i64: 128, 256>}, {pipeline_mode = #tpu.pipeline_mode<synchronous>, transform_indices = @transform_5, window_bounds = array<i64: 128, 128>}, {pipeline_mode = #tpu.pipeline_mode<synchronous>, transform_indices = @transform_6, window_bounds = array<i64: 128, 128>}, {pipeline_mode = #tpu.pipeline_mode<synchronous>, transform_indices = @transform_7, window_bounds = array<i64: 128, 128>}, {pipeline_mode = #tpu.pipeline_mode<synchronous>, transform_indices = @transform_8, window_bounds = array<i64: 1, 896>}, {transform_indices = @transform_9, window_bounds = array<i64: 8, 128>}, {transform_indices = @transform_10, window_bounds = array<i64: 8, 256>}]} {
    %c0 = arith.constant 0 : index
    %c0_0 = arith.constant 0 : index
    %0 = vector.load %arg1[%c0, %c0_0] : memref<8x128xbf16, #tpu.memory_space<vmem>>, vector<8x128xbf16>
    %c0_1 = arith.constant 0 : index
    %c0_2 = arith.constant 0 : index
    %1 = vector.load %arg3[%c0_1, %c0_2] : memref<128x128xbf16, #tpu.memory_space<vmem>>, vector<128x128xbf16>
    %cst = arith.constant dense<0.000000e+00> : vector<8x128xf32>
    %2 = tpu.matmul %0, %1, %cst {dimension_numbers = #tpu.dot_dimension_numbers<[1], [0], [0], [1], [0, 0, 1, 1], [], []>} : vector<8x128xbf16>, vector<128x128xbf16>, vector<8x128xf32> -> vector<8x128xf32>
    %c0_3 = arith.constant 0 : index
    %c0_4 = arith.constant 0 : index
    %3 = vector.load %arg9[%c0_3, %c0_4] : memref<1x896xf32, #tpu.memory_space<vmem>>, vector<1x128xf32>
    %4 = vector.broadcast %3 : vector<1x128xf32> to vector<8x128xf32>
    %5 = arith.addf %2, %4 : vector<8x128xf32>
    %cst_5 = arith.constant 0.000000e+00 : f32
    %6 = vector.broadcast %cst_5 : f32 to vector<8x128xf32>
    %7 = arith.maximumf %5, %6 : vector<8x128xf32>
    %8 = arith.truncf %7 : vector<8x128xf32> to vector<8x128xbf16>
    %c0_6 = arith.constant 0 : index
    %c0_7 = arith.constant 0 : index
    %9 = vector.load %arg4[%c0_6, %c0_7] : memref<128x128xbf16, #tpu.memory_space<vmem>>, vector<128x128xbf16>
    %cst_8 = arith.constant dense<0.000000e+00> : vector<8x128xf32>
    %10 = tpu.matmul %8, %9, %cst_8 {dimension_numbers = #tpu.dot_dimension_numbers<[1], [0], [0], [1], [0, 0, 1, 1], [], []>} : vector<8x128xbf16>, vector<128x128xbf16>, vector<8x128xf32> -> vector<8x128xf32>
    %c0_9 = arith.constant 0 : index
    %c128 = arith.constant 128 : index
    %11 = vector.load %arg9[%c0_9, %c128] : memref<1x896xf32, #tpu.memory_space<vmem>>, vector<1x128xf32>
    %12 = vector.broadcast %11 : vector<1x128xf32> to vector<8x128xf32>
    %13 = arith.addf %10, %12 : vector<8x128xf32>
    %cst_10 = arith.constant 0.000000e+00 : f32
    %14 = vector.broadcast %cst_10 : f32 to vector<8x128xf32>
    %15 = arith.maximumf %13, %14 : vector<8x128xf32>
    %16 = arith.truncf %15 : vector<8x128xf32> to vector<8x128xbf16>
    %c0_11 = arith.constant 0 : index
    %c0_12 = arith.constant 0 : index
    %17 = vector.load %arg5[%c0_11, %c0_12] : memref<128x256xbf16, #tpu.memory_space<vmem>>, vector<128x256xbf16>
    %cst_13 = arith.constant dense<0.000000e+00> : vector<8x256xf32>
    %18 = tpu.matmul %16, %17, %cst_13 {dimension_numbers = #tpu.dot_dimension_numbers<[1], [0], [0], [1], [0, 0, 1, 1], [], []>} : vector<8x128xbf16>, vector<128x256xbf16>, vector<8x256xf32> -> vector<8x256xf32>
    %c0_14 = arith.constant 0 : index
    %c256 = arith.constant 256 : index
    %19 = vector.load %arg9[%c0_14, %c256] : memref<1x896xf32, #tpu.memory_space<vmem>>, vector<1x256xf32>
    %20 = vector.broadcast %19 : vector<1x256xf32> to vector<8x256xf32>
    %21 = arith.addf %18, %20 : vector<8x256xf32>
    %22 = vector.extract_strided_slice %21 {offsets = [0, 0], sizes = [8, 128], strides = [1, 1]} : vector<8x256xf32> to vector<8x128xf32>
    %23 = vector.extract_strided_slice %21 {offsets = [0, 128], sizes = [8, 128], strides = [1, 1]} : vector<8x256xf32> to vector<8x128xf32>
    %cst_15 = arith.constant 5.000000e-01 : f32
    %24 = vector.broadcast %cst_15 : f32 to vector<8x128xf32>
    %25 = arith.mulf %24, %23 : vector<8x128xf32>
    %26 = math.exp %25 : vector<8x128xf32>
    %c0_16 = arith.constant 0 : index
    %c0_17 = arith.constant 0 : index
    %27 = vector.load %arg2[%c0_16, %c0_17] : memref<8x128xbf16, #tpu.memory_space<vmem>>, vector<8x128xbf16>
    %28 = arith.extf %27 : vector<8x128xbf16> to vector<8x128xf32>
    %29 = arith.mulf %28, %26 : vector<8x128xf32>
    %30 = arith.addf %29, %22 : vector<8x128xf32>
    %31 = arith.truncf %30 : vector<8x128xf32> to vector<8x128xbf16>
    %c0_18 = arith.constant 0 : index
    %c0_19 = arith.constant 0 : index
    %32 = vector.load %arg6[%c0_18, %c0_19] : memref<128x128xbf16, #tpu.memory_space<vmem>>, vector<128x128xbf16>
    %cst_20 = arith.constant dense<0.000000e+00> : vector<8x128xf32>
    %33 = tpu.matmul %31, %32, %cst_20 {dimension_numbers = #tpu.dot_dimension_numbers<[1], [0], [0], [1], [0, 0, 1, 1], [], []>} : vector<8x128xbf16>, vector<128x128xbf16>, vector<8x128xf32> -> vector<8x128xf32>
    %c0_21 = arith.constant 0 : index
    %c512 = arith.constant 512 : index
    %34 = vector.load %arg9[%c0_21, %c512] : memref<1x896xf32, #tpu.memory_space<vmem>>, vector<1x128xf32>
    %35 = vector.broadcast %34 : vector<1x128xf32> to vector<8x128xf32>
    %36 = arith.addf %33, %35 : vector<8x128xf32>
    %cst_22 = arith.constant 0.000000e+00 : f32
    %37 = vector.broadcast %cst_22 : f32 to vector<8x128xf32>
    %38 = arith.maximumf %36, %37 : vector<8x128xf32>
    %39 = arith.truncf %38 : vector<8x128xf32> to vector<8x128xbf16>
    %c0_23 = arith.constant 0 : index
    %c0_24 = arith.constant 0 : index
    %40 = vector.load %arg7[%c0_23, %c0_24] : memref<128x128xbf16, #tpu.memory_space<vmem>>, vector<128x128xbf16>
    %cst_25 = arith.constant dense<0.000000e+00> : vector<8x128xf32>
    %41 = tpu.matmul %39, %40, %cst_25 {dimension_numbers = #tpu.dot_dimension_numbers<[1], [0], [0], [1], [0, 0, 1, 1], [], []>} : vector<8x128xbf16>, vector<128x128xbf16>, vector<8x128xf32> -> vector<8x128xf32>
    %c0_26 = arith.constant 0 : index
    %c640 = arith.constant 640 : index
    %42 = vector.load %arg9[%c0_26, %c640] : memref<1x896xf32, #tpu.memory_space<vmem>>, vector<1x128xf32>
    %43 = vector.broadcast %42 : vector<1x128xf32> to vector<8x128xf32>
    %44 = arith.addf %41, %43 : vector<8x128xf32>
    %cst_27 = arith.constant 0.000000e+00 : f32
    %45 = vector.broadcast %cst_27 : f32 to vector<8x128xf32>
    %46 = arith.maximumf %44, %45 : vector<8x128xf32>
    %47 = arith.truncf %46 : vector<8x128xf32> to vector<8x128xbf16>
    %c0_28 = arith.constant 0 : index
    %c0_29 = arith.constant 0 : index
    %48 = vector.load %arg8[%c0_28, %c0_29] : memref<128x128xbf16, #tpu.memory_space<vmem>>, vector<128x128xbf16>
    %cst_30 = arith.constant dense<0.000000e+00> : vector<8x128xf32>
    %49 = tpu.matmul %47, %48, %cst_30 {dimension_numbers = #tpu.dot_dimension_numbers<[1], [0], [0], [1], [0, 0, 1, 1], [], []>} : vector<8x128xbf16>, vector<128x128xbf16>, vector<8x128xf32> -> vector<8x128xf32>
    %c0_31 = arith.constant 0 : index
    %c768 = arith.constant 768 : index
    %50 = vector.load %arg9[%c0_31, %c768] : memref<1x896xf32, #tpu.memory_space<vmem>>, vector<1x128xf32>
    %51 = vector.broadcast %50 : vector<1x128xf32> to vector<8x128xf32>
    %52 = arith.addf %49, %51 : vector<8x128xf32>
    %53 = arith.negf %52 : vector<8x128xf32>
    %54 = math.exp %53 : vector<8x128xf32>
    %cst_32 = arith.constant 1.000000e+00 : f32
    %55 = vector.broadcast %cst_32 : f32 to vector<8x128xf32>
    %56 = arith.addf %55, %54 : vector<8x128xf32>
    %57 = arith.divf %55, %56 : vector<8x128xf32>
    %58 = arith.truncf %57 : vector<8x128xf32> to vector<8x128xbf16>
    %c0_33 = arith.constant 0 : index
    %c0_34 = arith.constant 0 : index
    %59 = vector.load %arg10[%c0_33, %c0_34] : memref<8x128xbf16, #tpu.memory_space<vmem>>, vector<8x128xbf16>
    tpu.vector_store %arg10[%c0_33, %c0_34], %58 {strides = array<i32>} : memref<8x128xbf16, #tpu.memory_space<vmem>>, vector<8x128xbf16>,
    %c0_35 = arith.constant 0 : index
    %c0_36 = arith.constant 0 : index
    %60 = vector.load %arg11[%c0_35, %c0_36] : memref<8x256xf32, #tpu.memory_space<vmem>>, vector<8x256xf32>
    tpu.vector_store %arg11[%c0_35, %c0_36], %21 {strides = array<i32>} : memref<8x256xf32, #tpu.memory_space<vmem>>, vector<8x256xf32>,
    return
  }
  func.func @transform_0(%arg0: i32) -> (i32, i32) {
    %c0_i32 = arith.constant 0 : i32
    %c0_i32_0 = arith.constant 0 : i32
    return %arg0, %c0_i32 : i32, i32
  }
  func.func @transform_1(%arg0: i32) -> (i32, i32) {
    %c0_i32 = arith.constant 0 : i32
    %c0_i32_0 = arith.constant 0 : i32
    return %arg0, %c0_i32 : i32, i32
  }
  func.func @transform_2(%arg0: i32) -> (i32, i32) {
    %c0_i32 = arith.constant 0 : i32
    %c0_i32_0 = arith.constant 0 : i32
    %c0_i32_1 = arith.constant 0 : i32
    return %c0_i32, %c0_i32_0 : i32, i32
  }
  func.func @transform_3(%arg0: i32) -> (i32, i32) {
    %c0_i32 = arith.constant 0 : i32
    %c0_i32_0 = arith.constant 0 : i32
    %c0_i32_1 = arith.constant 0 : i32
    return %c0_i32, %c0_i32_0 : i32, i32
  }
  func.func @transform_4(%arg0: i32) -> (i32, i32) {
    %c0_i32 = arith.constant 0 : i32
    %c0_i32_0 = arith.constant 0 : i32
    %c0_i32_1 = arith.constant 0 : i32
    return %c0_i32, %c0_i32_0 : i32, i32
  }
  func.func @transform_5(%arg0: i32) -> (i32, i32) {
    %c0_i32 = arith.constant 0 : i32
    %c0_i32_0 = arith.constant 0 : i32
    %c0_i32_1 = arith.constant 0 : i32
    return %c0_i32, %c0_i32_0 : i32, i32
  }
  func.func @transform_6(%arg0: i32) -> (i32, i32) {
    %c0_i32 = arith.constant 0 : i32
    %c0_i32_0 = arith.constant 0 : i32
    %c0_i32_1 = arith.constant 0 : i32
    return %c0_i32, %c0_i32_0 : i32, i32
  }
  func.func @transform_7(%arg0: i32) -> (i32, i32) {
    %c0_i32 = arith.constant 0 : i32
    %c0_i32_0 = arith.constant 0 : i32
    %c0_i32_1 = arith.constant 0 : i32
    return %c0_i32, %c0_i32_0 : i32, i32
  }
  func.func @transform_8(%arg0: i32) -> (i32, i32) {
    %c0_i32 = arith.constant 0 : i32
    %c0_i32_0 = arith.constant 0 : i32
    %c0_i32_1 = arith.constant 0 : i32
    return %c0_i32, %c0_i32_0 : i32, i32
  }
  func.func @transform_9(%arg0: i32) -> (i32, i32) {
    %c0_i32 = arith.constant 0 : i32
    %c0_i32_0 = arith.constant 0 : i32
    return %arg0, %c0_i32 : i32, i32
  }
  func.func @transform_10(%arg0: i32) -> (i32, i32) {
    %c0_i32 = arith.constant 0 : i32
    %c0_i32_0 = arith.constant 0 : i32
    return %arg0, %c0_i32 : i32, i32
  }
}

</mosaic_0001>

<bundles_post_ra>
// kernel: tpu_custom_call.1
= control target key start
LH: loop header
LB: loop body
LE: loop exit
PB: predicated region body
PF: predicated region fallthrough
CT: control target
= control target key end

     0   :  { %16 = vsyncpa [#allocation3], 0  ;;  %s1716_s0 = inlined_call_operand.hbm [shape: bf16[8,128], index: 0, kind: input, shape index: {}]   ;;  %s1717_s1 = inlined_call_operand.hbm [shape: bf16[8,128], index: 1, kind: input, shape index: {}]   ;;  %s1718_s2 = inlined_call_operand.hbm [shape: bf16[128,128], index: 2, kind: input, shape index: {}]   ;;  %s1719_s3 = inlined_call_operand.hbm [shape: bf16[128,128], index: 3, kind: input, shape index: {}]   ;;  %s1720_s4 = inlined_call_operand.hbm [shape: bf16[128,256], index: 4, kind: input, shape index: {}]   ;;  %s1721_s5 = inlined_call_operand.hbm [shape: bf16[128,128], index: 5, kind: input, shape index: {}]   ;;  %s1722_s6 = inlined_call_operand.hbm [shape: bf16[128,128], index: 6, kind: input, shape index: {}]   ;;  %s1723_s7 = inlined_call_operand.hbm [shape: bf16[128,128], index: 7, kind: input, shape index: {}]   ;;  %s1724_s8 = inlined_call_operand.vmem [shape: f32[1,896], index: 8, kind: input, shape index: {}]   ;;  %s1725_s9 = inlined_call_operand.hbm [shape: bf16[8,128], index: 9, kind: output, shape index: {0}]   ;;  %s1726_s10 = inlined_call_operand.hbm [shape: f32[8,256], index: 10, kind: output, shape index: {1}]  }
   0x1   :  { %17 = vsyncpa [#allocation6], 0 }
   0x2   :  { %18 = vsyncpa [#allocation9], 0 }
   0x3   :  { %19 = vsyncpa [#allocation12], 0 }
   0x4   :  { %20 = vsyncpa [#allocation15], 0 }
   0x5   :  { %21 = vsyncpa [#allocation4], 0 }
   0x6   :  { %22 = vsyncpa [#allocation18], 0  ;;  %s1434_s13 = smov [#allocation5]   ;;  %s1200_s17 = scalar_lea.hbm %s1717_s1, 64 }
   0x7   :  { %s39_s14 = sshll.u32 %s1434_s13, 4  ;;  %p1201_p0 = scmp.ne.s32.totalorder %s1717_s1, %s1200_s17  ;;  %s40_s14 = int_to_ptr.vmem [resolvable:$true] %s39_s14 }
   0x8   :  { %p1204_p1 = scmp.lt.u32.totalorder %s1200_s17, %s1717_s1 }
   0xa   :  { %p1206_p2 = pnand %p1204_p1, %p1201_p0 }
   0xc   :  { %1209 = shalt.err (!%p1206_p2)
}
   0xd   :  { %s1210_s22 = scalar_lea.vmem %s40_s14, 64  ;;  %p1215_p4 = scmp.lt.s32.totalorder %s40_s14, %s40_s14 }
   0xe   :  { %p1211_p3 = scmp.ne.s32.totalorder %s40_s14, %s1210_s22  ;;  %p1216_p5 = scmp.lt.s32.totalorder %s1210_s22, %s1210_s22 }
  0x10   :  { %p1217_p6 = por %p1216_p5, %p1215_p4 }
  0x12   :  { %p1218_p7 = pnand %p1217_p6, %p1211_p3 }
  0x14   :  { %1221 = shalt.err (!%p1218_p7)
}
  0x15   :  { %42 = dma.hbm_to_vmem [thread:$0]  %s1717_s1, 64, %s40_s14, [#allocation6]  }
  0x16   :  { %s1435_s25 = smov [#allocation8]   ;;  %s1436_s27 = smov [#allocation11]  }
  0x17   :  { %s60_s26 = sshll.u32 %s1435_s25, 4  ;;  %s84_s28 = sshll.u32 %s1436_s27, 4  ;;  %s61_s26 = int_to_ptr.vmem [resolvable:$true] %s60_s26  ;;  %s85_s28 = int_to_ptr.vmem [resolvable:$true] %s84_s28 }
  0x18   :  { %s1222_s11 = scalar_lea.hbm %s1719_s3, 1024 }
  0x19   :  { %p1223_p8 = scmp.ne.s32.totalorder %s1719_s3, %s1222_s11  ;;  %p1226_p9 = scmp.lt.u32.totalorder %s1222_s11, %s1719_s3 }
  0x1b   :  { %p1228_p10 = pnand %p1226_p9, %p1223_p8 }
  0x1d   :  { %1231 = shalt.err (!%p1228_p10)
}
  0x1e   :  { %s1232_s1 = scalar_lea.vmem %s61_s26, 1024  ;;  %p1237_p12 = scmp.lt.s32.totalorder %s61_s26, %s61_s26 }
  0x1f   :  { %p1233_p11 = scmp.ne.s32.totalorder %s61_s26, %s1232_s1  ;;  %p1238_p13 = scmp.lt.s32.totalorder %s1232_s1, %s1232_s1 }
  0x21   :  { %p1239_p0 = por %p1238_p13, %p1237_p12 }
  0x23   :  { %p1240_p1 = pnand %p1239_p0, %p1233_p11 }
  0x25   :  { %1243 = shalt.err (!%p1240_p1)
}
  0x26   :  { %s1437_s14 = smov 64   ;;  %s1438_s17 = smov 4  }
  0x27   :  { %66 = dma.hbm_to_vmem [thread:$0]  %s1719_s3, 1024, %s61_s26, [#allocation9], %s1437_s14, %s1437_s14, %s1438_s17  }
  0x28   :  { %s1244_s22 = scalar_lea.hbm %s1721_s5, 1024 }
  0x29   :  { %p1245_p2 = scmp.ne.s32.totalorder %s1721_s5, %s1244_s22  ;;  %p1248_p3 = scmp.lt.u32.totalorder %s1244_s22, %s1721_s5 }
  0x2b   :  { %p1250_p4 = pnand %p1248_p3, %p1245_p2 }
  0x2d   :  { %1253 = shalt.err (!%p1250_p4)
}
  0x2e   :  { %s1254_s29 = scalar_lea.vmem %s85_s28, 1024  ;;  %p1259_p6 = scmp.lt.s32.totalorder %s85_s28, %s85_s28 }
  0x2f   :  { %p1255_p5 = scmp.ne.s32.totalorder %s85_s28, %s1254_s29  ;;  %p1260_p7 = scmp.lt.s32.totalorder %s1254_s29, %s1254_s29 }
  0x31   :  { %p1261_p8 = por %p1260_p7, %p1259_p6 }
  0x33   :  { %p1262_p9 = pnand %p1261_p8, %p1255_p5 }
  0x35   :  { %1265 = shalt.err (!%p1262_p9)
}
  0x36   :  { %90 = dma.hbm_to_vmem [thread:$0]  %s1721_s5, 1024, %s85_s28, [#allocation12], %s1437_s14, %s1437_s14, %s1438_s17  }
  0x37   :  { %s1439_s30 = smov [#allocation2]   ;;  %s1440_s12 = smov [#allocation7]  }
  0x38   :  { %s29_s11 = sshll.u32 %s1439_s30, 4  ;;  %s48_s13 = sshll.u32 %s1440_s12, 4  ;;  %s30_s11 = int_to_ptr.vmem [resolvable:$true] %s29_s11  ;;  %s49_s13 = int_to_ptr.vmem [resolvable:$true] %s48_s13 }
  0x39   :  { %s1266_s1 = scalar_lea.hbm %s1716_s0, 64 }
  0x3a   :  { %p1267_p10 = scmp.ne.s32.totalorder %s1716_s0, %s1266_s1  ;;  %p1270_p11 = scmp.lt.u32.totalorder %s1266_s1, %s1716_s0 }
  0x3c   :  { %p1272_p12 = pnand %p1270_p11, %p1267_p10 }
  0x3e   :  { %1275 = shalt.err (!%p1272_p12)
}
  0x3f   :  { %s1276_s5 = scalar_lea.vmem %s30_s11, 64  ;;  %p1281_p0 = scmp.lt.s32.totalorder %s30_s11, %s30_s11 }
  0x40   :  { %p1277_p13 = scmp.ne.s32.totalorder %s30_s11, %s1276_s5  ;;  %p1282_p1 = scmp.lt.s32.totalorder %s1276_s5, %s1276_s5 }
  0x42   :  { %p1283_p2 = por %p1282_p1, %p1281_p0 }
  0x44   :  { %p1284_p3 = pnand %p1283_p2, %p1277_p13 }
  0x46   :  { %1287 = shalt.err (!%p1284_p3)
}
  0x47   :  { %32 = dma.hbm_to_vmem [thread:$0]  %s1716_s0, 64, %s30_s11, [#allocation3]  }
  0x48   :  { %s1288_s25 = scalar_lea.hbm %s1718_s2, 1024 }
  0x49   :  { %p1289_p4 = scmp.ne.s32.totalorder %s1718_s2, %s1288_s25  ;;  %p1292_p5 = scmp.lt.u32.totalorder %s1288_s25, %s1718_s2 }
  0x4b   :  { %p1294_p6 = pnand %p1292_p5, %p1289_p4 }
  0x4d   :  { %1297 = shalt.err (!%p1294_p6)
}
  0x4e   :  { %s1298_s30 = scalar_lea.vmem %s49_s13, 1024  ;;  %p1303_p8 = scmp.lt.s32.totalorder %s49_s13, %s49_s13 }
  0x4f   :  { %p1299_p7 = scmp.ne.s32.totalorder %s49_s13, %s1298_s30  ;;  %p1304_p9 = scmp.lt.s32.totalorder %s1298_s30, %s1298_s30 }
  0x51   :  { %p1305_p10 = por %p1304_p9, %p1303_p8 }
  0x53   :  { %p1306_p11 = pnand %p1305_p10, %p1299_p7 }
  0x55   :  { %1309 = shalt.err (!%p1306_p11)
}
  0x56   :  { %54 = dma.hbm_to_vmem [thread:$0]  %s1718_s2, 1024, %s49_s13, [#allocation6], %s1437_s14, %s1437_s14, %s1438_s17  }
  0x57   :  { %s1441_s12 = smov [#allocation10]   ;;  %s1310_s18 = scalar_lea.hbm %s1720_s4, 2048 }
  0x58   :  { %s72_s15 = sshll.u32 %s1441_s12, 4  ;;  %p1311_p12 = scmp.ne.s32.totalorder %s1720_s4, %s1310_s18  ;;  %s73_s15 = int_to_ptr.vmem [resolvable:$true] %s72_s15 }
  0x59   :  { %p1314_p13 = scmp.lt.u32.totalorder %s1310_s18, %s1720_s4 }
  0x5b   :  { %p1316_p0 = pnand %p1314_p13, %p1311_p12 }
  0x5d   :  { %1319 = shalt.err (!%p1316_p0)
}
  0x5e   :  { %s1320_s28 = scalar_lea.vmem %s73_s15, 2048  ;;  %p1325_p2 = scmp.lt.s32.totalorder %s73_s15, %s73_s15 }
  0x5f   :  { %p1321_p1 = scmp.ne.s32.totalorder %s73_s15, %s1320_s28  ;;  %p1326_p3 = scmp.lt.s32.totalorder %s1320_s28, %s1320_s28 }
  0x61   :  { %p1327_p4 = por %p1326_p3, %p1325_p2 }
  0x63   :  { %p1328_p5 = pnand %p1327_p4, %p1321_p1 }
  0x65   :  { %1331 = shalt.err (!%p1328_p5)
}
  0x66   :  { %s1442_s2 = smov 128   ;;  %s1443_s13 = smov 8  }
  0x67   :  { %78 = dma.hbm_to_vmem [thread:$0]  %s1720_s4, 2048, %s73_s15, [#allocation9], %s1442_s2, %s1442_s2, %s1443_s13  }
  0x68   :  { %s1444_s24 = smov [#allocation13]   ;;  %s1445_s27 = smov [#allocation14]  }
  0x69   :  { %s96_s25 = sshll.u32 %s1444_s24, 4  ;;  %s108_s29 = sshll.u32 %s1445_s27, 4  ;;  %s97_s25 = int_to_ptr.vmem [resolvable:$true] %s96_s25  ;;  %s1587_s29 = int_to_ptr.vmem [resolvable:$true] %s108_s29 }
  0x6a   :  { %s1332_s30 = scalar_lea.hbm %s1722_s6, 1024 }
  0x6b   :  { %p1333_p6 = scmp.ne.s32.totalorder %s1722_s6, %s1332_s30  ;;  %p1336_p7 = scmp.lt.u32.totalorder %s1332_s30, %s1722_s6 }
  0x6d   :  { %p1338_p8 = pnand %p1336_p7, %p1333_p6 }
  0x6f   :  { %1341 = shalt.err (!%p1338_p8)
}
  0x70   :  { %s1342_s4 = scalar_lea.vmem %s97_s25, 1024  ;;  %p1347_p10 = scmp.lt.s32.totalorder %s97_s25, %s97_s25 }
  0x71   :  { %p1343_p9 = scmp.ne.s32.totalorder %s97_s25, %s1342_s4  ;;  %p1348_p11 = scmp.lt.s32.totalorder %s1342_s4, %s1342_s4 }
  0x73   :  { %p1349_p12 = por %p1348_p11, %p1347_p10 }
  0x75   :  { %p1350_p13 = pnand %p1349_p12, %p1343_p9 }
  0x77   :  { %1353 = shalt.err (!%p1350_p13)
}
  0x78   :  { %102 = dma.hbm_to_vmem [thread:$0]  %s1722_s6, 1024, %s97_s25, [#allocation12], %s1437_s14, %s1437_s14, %s1438_s17  }
  0x79   :  { %s1354_s20 = scalar_lea.hbm %s1723_s7, 1024 }
  0x7a   :  { %p1355_p0 = scmp.ne.s32.totalorder %s1723_s7, %s1354_s20  ;;  %p1358_p1 = scmp.lt.u32.totalorder %s1354_s20, %s1723_s7 }
  0x7c   :  { %p1360_p2 = pnand %p1358_p1, %p1355_p0 }
  0x7e   :  { %1363 = shalt.err (!%p1360_p2)
}
  0x7f   :  { %s1364_s13 = scalar_lea.vmem %s1587_s29, 1024  ;;  %p1369_p4 = scmp.lt.s32.totalorder %s1587_s29, %s1587_s29 }
  0x80   :  { %p1365_p3 = scmp.ne.s32.totalorder %s1587_s29, %s1364_s13  ;;  %p1370_p5 = scmp.lt.s32.totalorder %s1364_s13, %s1364_s13 }
  0x82   :  { %p1371_p6 = por %p1370_p5, %p1369_p4 }
  0x84   :  { %p1372_p7 = pnand %p1371_p6, %p1365_p3 }
  0x86   :  { %1375 = shalt.err (!%p1372_p7)
}
  0x87   :  { %114 = dma.hbm_to_vmem [thread:$0]  %s1723_s7, 1024, %s1587_s29, [#allocation15], %s1437_s14, %s1437_s14, %s1438_s17  }
  0x88   :  { %1420 = dma.done.wait [#allocation3], 64  }
  0x89   :  { %1421 = vsyncadd [#allocation3], 4294967232 }
  0x8a   :  { %1422 = dma.done.wait [#allocation6], 1088  }
  0x8b   :  { %1423 = vsyncadd [#allocation6], 4294966208 }
  0x8c   :  { %1424 = dma.done.wait [#allocation9], 3072  }
  0x8d   :  { %1425 = vsyncadd [#allocation9], 4294964224 }
  0x8e   :  { %1426 = dma.done.wait [#allocation12], 2048  }
  0x8f   :  { %1427 = vsyncadd [#allocation12], 4294965248 }
  0x90   :  { %1428 = dma.done.wait [#allocation15], 1024  }
  0x91   :  { %1429 = vsyncadd [#allocation15], 4294966272  ;;  %v1446_v0 = vmov 0.0   ;;  %vm1447_vm0 = vmmov 0   ;;  %v1130_v1 = vld [vmem:[#allocation7] sm:$0xff]   ;;  %v1131_v2 = vld [vmem:[#allocation7 + $0x8] sm:$0xff]  }
  0x92   :  { %1013 = vmatprep.subr.bf16.mxu0 %v1446_v0  ;;  %1029 = vmatprep.mubr.msk.bf16.mxu0 %vm1447_vm0, %v1446_v0  ;;  %v1132_v3 = vld [vmem:[#allocation7 + $0x10] sm:$0xff]   ;;  %v1138_v4 = vld [vmem:[#allocation8] sm:$0xff]   ;;  %v1133_v5 = vld [vmem:[#allocation7 + $0x18] sm:$0xff]   ;;  %v1448_v42 = vmov 0   ;;  %s1449_s30 = smov [#allocation17]  }
  0x93   :  { %1033 = vmatprep.subr.bf16.mxu1 %v1446_v0  ;;  %1049 = vmatprep.mubr.msk.bf16.mxu1 %vm1447_vm0, %v1446_v0  ;;  %v1139_v6 = vld [vmem:[#allocation8 + $0x8] sm:$0xff]   ;;  %v1134_v7 = vld [vmem:[#allocation7 + $0x20] sm:$0xff]   ;;  %v1140_v8 = vld [vmem:[#allocation8 + $0x10] sm:$0xff]   ;;  %s889_s0 = sshll.u32 %s1449_s30, 4  ;;  %s890_s0 = int_to_ptr.vmem [resolvable:$true] %s889_s0 }
  0x94   :  { %1014 = vmatpush3.bf16.msra.mxu0 %v1130_v1  ;;  %1034 = vmatpush3.bf16.msra.mxu1 %v1138_v4  ;;  %v1135_v9 = vld [vmem:[#allocation7 + $0x28] sm:$0xff]   ;;  %v1141_v10 = vld [vmem:[#allocation8 + $0x18] sm:$0xff]   ;;  %v1136_v11 = vld [vmem:[#allocation7 + $0x30] sm:$0xff]   ;;  %s1376_s11 = scalar_lea.vmem %s890_s0, 256  ;;  %p1381_p9 = scmp.lt.s32.totalorder %s890_s0, %s890_s0 }
  0x95   :  { %1015 = vmatprep.subr.bf16.mxu0 %v1446_v0  ;;  %1035 = vmatprep.subr.bf16.mxu1 %v1446_v0  ;;  %v1142_v12 = vld [vmem:[#allocation8 + $0x20] sm:$0xff]   ;;  %v1137_v13 = vld [vmem:[#allocation7 + $0x38] sm:$0xff]   ;;  %v1143_v14 = vld [vmem:[#allocation8 + $0x28] sm:$0xff]   ;;  %p1377_p8 = scmp.ne.s32.totalorder %s890_s0, %s1376_s11  ;;  %p1382_p10 = scmp.lt.s32.totalorder %s1376_s11, %s1376_s11 }
  0x96   :  { %v142_v15 = vld [vmem:[#allocation2] sm:$0xf]  ;;  %v1144_v16 = vld [vmem:[#allocation8 + $0x30] sm:$0xff]   ;;  %v1146_v18 = vld [vmem:[#allocation10] ss:$8 sps:$4 sm:$0xff]  }
  0x97   :  { %v1145_v17 = vld [vmem:[#allocation8 + $0x38] sm:$0xff]   ;;  %v1148_v19 = vld [vmem:[#allocation10 + $0x4] ss:$8 sps:$4 sm:$0xff]   ;;  %v1152_v23 = vld [vmem:[#allocation10 + $0x20] ss:$8 sps:$4 sm:$0xff]   ;;  %p1383_p11 = por %p1382_p10, %p1381_p9 }
  0x98   :  { %1016 = vmatpush3.bf16.msra.mxu0 %v1131_v2  ;;  %1036 = vmatpush3.bf16.msra.mxu1 %v1139_v6  ;;  %v1151_v20 = vld [vmem:[#allocation10 + $0x14] ss:$8 sps:$4 sm:$0xff]   ;;  %v1149_v21 = vld [vmem:[#allocation10 + $0x10] ss:$8 sps:$4 sm:$0xff]   ;;  %v1154_v22 = vld [vmem:[#allocation10 + $0x24] ss:$8 sps:$4 sm:$0xff]   ;;  %v387_v2 = vlaneseq }
  0x99   :  { %1017 = vmatprep.subr.bf16.mxu0 %v1446_v0  ;;  %1037 = vmatprep.subr.bf16.mxu1 %v1446_v0  ;;  %v1157_v24 = vld [vmem:[#allocation10 + $0x34] ss:$8 sps:$4 sm:$0xff]   ;;  %v1155_v25 = vld [vmem:[#allocation10 + $0x30] ss:$8 sps:$4 sm:$0xff]   ;;  %v1160_v26 = vld [vmem:[#allocation10 + $0x44] ss:$8 sps:$4 sm:$0xff]   ;;  %p1384_p12 = pnand %p1383_p11, %p1377_p8 }
  0x9a   :  { %v1158_v27 = vld [vmem:[#allocation10 + $0x40] ss:$8 sps:$4 sm:$0xff]   ;;  %v1163_v28 = vld [vmem:[#allocation10 + $0x54] ss:$8 sps:$4 sm:$0xff]   ;;  %v1161_v29 = vld [vmem:[#allocation10 + $0x50] ss:$8 sps:$4 sm:$0xff]  }
  0x9b   :  { %v1166_v30 = vld [vmem:[#allocation10 + $0x64] ss:$8 sps:$4 sm:$0xff]   ;;  %v1164_v31 = vld [vmem:[#allocation10 + $0x60] ss:$8 sps:$4 sm:$0xff]   ;;  %v906_v32 = vld [vmem:[%s1724_s8] ss:$0 sm:$0xff] }
  0x9c   :  { %1018 = vmatpush3.bf16.msra.mxu0 %v1132_v3  ;;  %1038 = vmatpush3.bf16.msra.mxu1 %v1140_v8  ;;  %v1169_v40 = vld [vmem:[#allocation10 + $0x74] ss:$8 sps:$4 sm:$0xff]   ;;  %v1167_v41 = vld [vmem:[#allocation10 + $0x70] ss:$8 sps:$4 sm:$0xff]   ;;  %v1170_v43 = vld [vmem:[#allocation11] sm:$0xff]   ;;  %v388_v3 = vshrl.u32 %v387_v2, 7 }
  0x9d   :  { %1019 = vmatprep.subr.bf16.mxu0 %v1446_v0  ;;  %1039 = vmatprep.subr.bf16.mxu1 %v1446_v0  ;;  %v1171_v44 = vld [vmem:[#allocation11 + $0x8] sm:$0xff]   ;;  %v915_v45 = vld [vmem:[%s1724_s8 + $0x1] ss:$0 sm:$0xff]  ;;  %v1173_v54 = vld [vmem:[#allocation11 + $0x18] sm:$0xff]  }
  0x9e   :  { %v1172_v53 = vld [vmem:[#allocation11 + $0x10] sm:$0xff]   ;;  %v1174_v55 = vld [vmem:[#allocation11 + $0x20] sm:$0xff]   ;;  %v1175_v56 = vld [vmem:[#allocation11 + $0x28] sm:$0xff]   ;;  %v389_v4 = vsub.s32 0, %v388_v3  ;;  %v393_v6 = vsub.s32 1, %v388_v3 }
  0x9f   :  { %v1176_v57 = vld [vmem:[#allocation11 + $0x30] sm:$0xff]   ;;  %v1177_v58 = vld [vmem:[#allocation11 + $0x38] sm:$0xff]   ;;  %v1178_v59 = vld [vmem:[#allocation13] sm:$0xff]  }
  0xa0   :  { %1020 = vmatpush3.bf16.msra.mxu0 %v1133_v5  ;;  %1040 = vmatpush3.bf16.msra.mxu1 %v1141_v10  ;;  %v1179_v60 = vld [vmem:[#allocation13 + $0x8] sm:$0xff]   ;;  %v1180_v61 = vld [vmem:[#allocation13 + $0x10] sm:$0xff]   ;;  %v1181_v62 = vld [vmem:[#allocation13 + $0x18] sm:$0xff]  }
  0xa1   :  { %1021 = vmatprep.subr.bf16.mxu0 %v1446_v0  ;;  %1041 = vmatprep.subr.bf16.mxu1 %v1446_v0  ;;  %v1182_v63 = vld [vmem:[#allocation13 + $0x20] sm:$0xff]   ;;  %v1183_v1 = vld [vmem:[#allocation13 + $0x28] sm:$0xff]   ;;  %v385_v5 = vld [vmem:[%s1724_s8 + $0x2] sm:$0x3] }
  0xa2   :  { %v394_v8 = vrot.slane %v385_v5, %v393_v6 }
  0xa4   :  { %1022 = vmatpush3.bf16.msra.mxu0 %v1134_v7  ;;  %1042 = vmatpush3.bf16.msra.mxu1 %v1142_v12  ;;  %v390_v7 = vrot.slane %v385_v5, %v389_v4 }
  0xa5   :  { %1023 = vmatprep.subr.bf16.mxu0 %v1446_v0  ;;  %1043 = vmatprep.subr.bf16.mxu1 %v1446_v0 }
  0xa8   :  { %1024 = vmatpush3.bf16.msra.mxu0 %v1135_v9  ;;  %1044 = vmatpush3.bf16.msra.mxu1 %v1143_v14 }
  0xa9   :  { %1025 = vmatprep.subr.bf16.mxu0 %v1446_v0  ;;  %1045 = vmatprep.subr.bf16.mxu1 %v1446_v0 }
  0xac   :  { %1026 = vmatpush3.bf16.msra.mxu0 %v1136_v11  ;;  %1046 = vmatpush3.bf16.msra.mxu1 %v1144_v16 }
  0xad   :  { %1027 = vmatprep.subr.bf16.mxu0 %v1446_v0  ;;  %1047 = vmatprep.subr.bf16.mxu1 %v1446_v0 }
  0xb0   :  { %1028 = vmatpush3.bf16.msra.mxu0 %v1137_v13  ;;  %1048 = vmatpush3.bf16.msra.mxu1 %v1145_v17  ;;  %v521_v17 = vld [vmem:[#allocation5] sm:$0xf] }
  0xb1   :  { %1053 = vmatprep.subr.bf16.mxu1 %v1446_v0  ;;  %477 = vmatprep.subr.bf16.mxu0 %v1148_v19 }
  0xb3   :  { %1030 = vmatmul.mubr.bf16.vlgmr.msra.gmra.mrb[0].mxu0 %v142_v15 }
  0xb4   :  { %478 = vmatpush1.bf16.msra.mxu0 %v1146_v18  ;;  %509 = vmatprep.mubr.bf16.mxu0 %v1448_v42  ;;  %v522_v18 = vunpack.c.l.bf16 %v521_v17 }
  0xb5   :  { %479 = vmatprep.subr.bf16.mxu0 %v1151_v20 }
  0xb8   :  { %480 = vmatpush1.bf16.msra.mxu0 %v1149_v21 }
  0xb9   :  { %481 = vmatprep.subr.bf16.mxu0 %v1154_v22 }
  0xbc   :  { %482 = vmatpush1.bf16.msra.mxu0 %v1152_v23  ;;  %v1184_v23 = vld [vmem:[#allocation13 + $0x30] sm:$0xff]  }
  0xbd   :  { %483 = vmatprep.subr.bf16.mxu0 %v1157_v24  ;;  %v1185_v24 = vld [vmem:[#allocation13 + $0x38] sm:$0xff]  }
  0xc0   :  { %484 = vmatpush1.bf16.msra.mxu0 %v1155_v25  ;;  %v1186_v25 = vld [vmem:[#allocation14] sm:$0xff]  }
  0xc1   :  { %485 = vmatprep.subr.bf16.mxu0 %v1160_v26  ;;  %v1187_v26 = vld [vmem:[#allocation14 + $0x8] sm:$0xff]  }
  0xc4   :  { %486 = vmatpush1.bf16.msra.mxu0 %v1158_v27  ;;  %v1188_v27 = vld [vmem:[#allocation14 + $0x10] sm:$0xff]  }
  0xc5   :  { %487 = vmatprep.subr.bf16.mxu0 %v1163_v28  ;;  %v1189_v28 = vld [vmem:[#allocation14 + $0x18] sm:$0xff]  }
  0xc8   :  { %488 = vmatpush1.bf16.msra.mxu0 %v1161_v29  ;;  %v1190_v29 = vld [vmem:[#allocation14 + $0x20] sm:$0xff]  }
  0xc9   :  { %489 = vmatprep.subr.bf16.mxu0 %v1166_v30  ;;  %v1191_v30 = vld [vmem:[#allocation14 + $0x28] sm:$0xff]  }
  0xcc   :  { %490 = vmatpush1.bf16.msra.mxu0 %v1164_v31  ;;  %v940_v31 = vld [vmem:[%s1724_s8 + $0x4] ss:$0 sm:$0xff] }
  0xcd   :  { %491 = vmatprep.subr.bf16.mxu0 %v1169_v40  ;;  %v1193_v40 = vld [vmem:[#allocation14 + $0x38] sm:$0xff]  }
  0xd0   :  { %492 = vmatpush1.bf16.msra.mxu0 %v1167_v41  ;;  %v949_v41 = vld [vmem:[%s1724_s8 + $0x5] ss:$0 sm:$0xff] }
  0xd1   :  { %1073 = vmatprep.subr.bf16.mxu0 %v1446_v0 }
 0x186   :  { %v248_v33 = vpop.f32.mrb[0].mxu0 }
 0x187   :  { %v249_v34 = vadd.f32 %v906_v32, %v248_v33  ;;  %v1031_v35 = vpop.f32.mrb[1].mxu0 }
 0x188   :  { %v251_v36 = vpop.f32.mrb[2].mxu0 }
 0x189   :  { %v254_v37 = vmax.f32 %v249_v34, 0.0  ;;  %v1032_v38 = vpop.f32.mrb[3].mxu0 }
 0x18b   :  { %v255_v39 = vpack.c.bf16 %v254_v37, %v254_v37 }
 0x18d   :  { %1050 = vmatmul.mubr.bf16.vlgmr.msra.gmra.mrb[0].mxu1 %v255_v39  ;;  %v1192_v39 = vld [vmem:[#allocation14 + $0x30] sm:$0xff]  }
 0x18e   :  { %1069 = vmatprep.mubr.msk.bf16.mxu1 %vm1447_vm0, %v1446_v0  ;;  %1054 = vmatpush3.bf16.msra.mxu1 %v1170_v43 }
 0x18f   :  { %1055 = vmatprep.subr.bf16.mxu1 %v1446_v0 }
 0x192   :  { %1056 = vmatpush3.bf16.msra.mxu1 %v1171_v44 }
 0x193   :  { %1057 = vmatprep.subr.bf16.mxu1 %v1446_v0 }
 0x196   :  { %1058 = vmatpush3.bf16.msra.mxu1 %v1172_v53 }
 0x197   :  { %1059 = vmatprep.subr.bf16.mxu1 %v1446_v0 }
 0x19a   :  { %1060 = vmatpush3.bf16.msra.mxu1 %v1173_v54 }
 0x19b   :  { %1061 = vmatprep.subr.bf16.mxu1 %v1446_v0 }
 0x19e   :  { %1062 = vmatpush3.bf16.msra.mxu1 %v1174_v55 }
 0x19f   :  { %1063 = vmatprep.subr.bf16.mxu1 %v1446_v0 }
 0x1a2   :  { %1064 = vmatpush3.bf16.msra.mxu1 %v1175_v56 }
 0x1a3   :  { %1065 = vmatprep.subr.bf16.mxu1 %v1446_v0 }
 0x1a6   :  { %1066 = vmatpush3.bf16.msra.mxu1 %v1176_v57 }
 0x1a7   :  { %1067 = vmatprep.subr.bf16.mxu1 %v1446_v0 }
 0x1aa   :  { %1068 = vmatpush3.bf16.msra.mxu1 %v1177_v58 }
 0x1ab   :  { %1093 = vmatprep.subr.bf16.mxu1 %v1446_v0 }
 0x260   :  { %v361_v46 = vpop.f32.mrb[0].mxu1 }
 0x261   :  { %v362_v47 = vadd.f32 %v915_v45, %v361_v46  ;;  %v1051_v48 = vpop.f32.mrb[1].mxu1 }
 0x262   :  { %v364_v49 = vpop.f32.mrb[2].mxu1 }
 0x263   :  { %v367_v50 = vmax.f32 %v362_v47, 0.0  ;;  %v1052_v51 = vpop.f32.mrb[3].mxu1 }
 0x265   :  { %v368_v52 = vpack.c.bf16 %v367_v50, %v367_v50 }
 0x267   :  { %510 = vmatmul.mubr.bf16.vlgmr.msra.gmra.mrb[4].mxu0 %v368_v52 }
 0x268   :  { %1089 = vmatprep.mubr.msk.bf16.mxu0 %vm1447_vm0, %v1446_v0  ;;  %1074 = vmatpush3.bf16.msra.mxu0 %v1178_v59 }
 0x269   :  { %1075 = vmatprep.subr.bf16.mxu0 %v1446_v0 }
 0x26c   :  { %1076 = vmatpush3.bf16.msra.mxu0 %v1179_v60 }
 0x26d   :  { %1077 = vmatprep.subr.bf16.mxu0 %v1446_v0 }
 0x270   :  { %1078 = vmatpush3.bf16.msra.mxu0 %v1180_v61 }
 0x271   :  { %1079 = vmatprep.subr.bf16.mxu0 %v1446_v0 }
 0x274   :  { %1080 = vmatpush3.bf16.msra.mxu0 %v1181_v62 }
 0x275   :  { %1081 = vmatprep.subr.bf16.mxu0 %v1446_v0 }
 0x278   :  { %1082 = vmatpush3.bf16.msra.mxu0 %v1182_v63 }
 0x279   :  { %1083 = vmatprep.subr.bf16.mxu0 %v1446_v0 }
 0x27c   :  { %1084 = vmatpush3.bf16.msra.mxu0 %v1183_v1 }
 0x27d   :  { %1085 = vmatprep.subr.bf16.mxu0 %v1446_v0 }
 0x280   :  { %1086 = vmatpush3.bf16.msra.mxu0 %v1184_v23 }
 0x281   :  { %1087 = vmatprep.subr.bf16.mxu0 %v1446_v0 }
 0x284   :  { %1088 = vmatpush3.bf16.msra.mxu0 %v1185_v24 }
 0x33a   :  { %v511_v9 = vpop.f32.mrb[4].mxu0 }
 0x33b   :  { %v512_v10 = vadd.f32 %v511_v9, %v390_v7  ;;  %v513_v11 = vpop.f32.mrb[5].mxu0 }
 0x33c   :  { %v514_v12 = vadd.f32 %v513_v11, %v394_v8  ;;  %v515_v13 = vpop.f32.mrb[6].mxu0 }
 0x33d   :  { %871 = vst [vmem:[#allocation17] sm:$0xff] %v512_v10  ;;  %v516_v14 = vpop.f32.mrb[7].mxu0 }
 0x33e   :  { %v518_v15 = vmul.f32 0.5, %v514_v12  ;;  %872 = vst [vmem:[#allocation17 + $0x8] sm:$0xff] %v514_v12 }
 0x340   :  { %v519_v16 = vmul.f32 1.442695, %v518_v15 }
 0x342   :  { %1194 = vpow2.f32 %v519_v16 }
 0x34c   :  { %v1195_v19 = vpop.eup %1194 }
 0x34d   :  { %v523_v20 = vmul.f32 %v1195_v19, %v522_v18 }
 0x34f   :  { %v524_v21 = vadd.f32 %v523_v20, %v512_v10 }
 0x351   :  { %v525_v22 = vpack.c.bf16 %v524_v21, %v524_v21 }
 0x353   :  { %1070 = vmatmul.mubr.bf16.vlgmr.msra.gmra.mrb[4].mxu1 %v525_v22 }
 0x354   :  { %1109 = vmatprep.mubr.msk.bf16.mxu1 %vm1447_vm0, %v1446_v0  ;;  %1094 = vmatpush3.bf16.msra.mxu1 %v1186_v25 }
 0x355   :  { %1095 = vmatprep.subr.bf16.mxu1 %v1446_v0 }
 0x358   :  { %1096 = vmatpush3.bf16.msra.mxu1 %v1187_v26 }
 0x359   :  { %1097 = vmatprep.subr.bf16.mxu1 %v1446_v0 }
 0x35c   :  { %1098 = vmatpush3.bf16.msra.mxu1 %v1188_v27 }
 0x35d   :  { %1099 = vmatprep.subr.bf16.mxu1 %v1446_v0 }
 0x360   :  { %1100 = vmatpush3.bf16.msra.mxu1 %v1189_v28 }
 0x361   :  { %1101 = vmatprep.subr.bf16.mxu1 %v1446_v0 }
 0x364   :  { %1102 = vmatpush3.bf16.msra.mxu1 %v1190_v29 }
 0x365   :  { %1103 = vmatprep.subr.bf16.mxu1 %v1446_v0 }
 0x368   :  { %1104 = vmatpush3.bf16.msra.mxu1 %v1191_v30 }
 0x369   :  { %1105 = vmatprep.subr.bf16.mxu1 %v1446_v0 }
 0x36c   :  { %1106 = vmatpush3.bf16.msra.mxu1 %v1192_v39 }
 0x36d   :  { %1107 = vmatprep.subr.bf16.mxu1 %v1446_v0 }
 0x370   :  { %1108 = vmatpush3.bf16.msra.mxu1 %v1193_v40 }
 0x426   :  { %v631_v32 = vpop.f32.mrb[4].mxu1 }
 0x427   :  { %v632_v33 = vadd.f32 %v940_v31, %v631_v32  ;;  %v1071_v34 = vpop.f32.mrb[5].mxu1 }
 0x428   :  { %v634_v35 = vpop.f32.mrb[6].mxu1 }
 0x429   :  { %v637_v36 = vmax.f32 %v632_v33, 0.0  ;;  %v1072_v37 = vpop.f32.mrb[7].mxu1 }
 0x42b   :  { %v638_v38 = vpack.c.bf16 %v637_v36, %v637_v36 }
 0x42d   :  { %1090 = vmatmul.mubr.bf16.vlgmr.msra.gmra.mrb[8].mxu0 %v638_v38 }
 0x500   :  { %v744_v42 = vpop.f32.mrb[8].mxu0 }
 0x501   :  { %v745_v43 = vadd.f32 %v949_v41, %v744_v42  ;;  %v1091_v44 = vpop.f32.mrb[9].mxu0 }
 0x502   :  { %v747_v45 = vpop.f32.mrb[10].mxu0 }
 0x503   :  { %v750_v46 = vmax.f32 %v745_v43, 0.0  ;;  %v1092_v47 = vpop.f32.mrb[11].mxu0 }
 0x505   :  { %v751_v48 = vpack.c.bf16 %v750_v46, %v750_v46 }
 0x507   :  { %1110 = vmatmul.mubr.bf16.vlgmr.msra.gmra.mrb[8].mxu1 %v751_v48 }
 0x508   :  { %1387 = shalt.err (!%p1384_p12)
}
 0x509   :  { %s1388_s4 = scalar_lea.hbm %s1726_s10, 256 }
 0x50a   :  { %p1389_p13 = scmp.ne.s32.totalorder %s1726_s10, %s1388_s4  ;;  %p1392_p0 = scmp.lt.u32.totalorder %s1388_s4, %s1726_s10 }
 0x50c   :  { %p1394_p1 = pnand %p1392_p0, %p1389_p13 }
 0x50e   :  { %1397 = shalt.err (!%p1394_p1)
}
 0x50f   :  { %892 = dma.vmem_to_hbm [thread:$0]  %s890_s0, 256, %s1726_s10, [#allocation18]   ;;  %v958_v0 = vld [vmem:[%s1724_s8 + $0x6] ss:$0 sm:$0xff] }
 0x510   :  { %s1450_s2 = smov [#allocation16]  }
 0x511   :  { %s879_s13 = sshll.u32 %s1450_s2, 4  ;;  %s880_s13 = int_to_ptr.vmem [resolvable:$true] %s879_s13 }
 0x512   :  { %s1398_s10 = scalar_lea.vmem %s880_s13, 64  ;;  %p1403_p3 = scmp.lt.s32.totalorder %s880_s13, %s880_s13 }
 0x513   :  { %p1399_p2 = scmp.ne.s32.totalorder %s880_s13, %s1398_s10  ;;  %p1404_p4 = scmp.lt.s32.totalorder %s1398_s10, %s1398_s10 }
 0x515   :  { %p1405_p5 = por %p1404_p4, %p1403_p3 }
 0x517   :  { %p1406_p6 = pnand %p1405_p5, %p1399_p2 }
 0x5da   :  { %v857_v49 = vpop.f32.mrb[8].mxu1 }
 0x5db   :  { %v858_v50 = vadd.f32 %v958_v0, %v857_v49  ;;  %v1111_v51 = vpop.f32.mrb[9].mxu1 }
 0x5dc   :  { %v860_v52 = vpop.f32.mrb[10].mxu1 }
 0x5dd   :  { %v967_v53 = vmul.f32 -1.442695, %v858_v50  ;;  %v1112_v54 = vpop.f32.mrb[11].mxu1 }
 0x5df   :  { %1196 = vpow2.f32 %v967_v53 }
 0x5e9   :  { %v1197_v55 = vpop.eup %1196 }
 0x5ea   :  { %v866_v56 = vadd.f32 1.0, %v1197_v55 }
 0x5ec   :  { %1198 = vrcp.f32 %v866_v56 }
 0x5f6   :  { %v1199_v57 = vpop.eup %1198 }
 0x5f7   :  { %v869_v58 = vpack.c.bf16 %v1199_v57, %v1199_v57 }
 0x5f9   :  { %870 = vst [vmem:[#allocation16] sm:$0xf] %v869_v58 }
 0x5fa   :  { %1409 = shalt.err (!%p1406_p6)
}
 0x5fb   :  { %s1410_s22 = scalar_lea.hbm %s1725_s9, 64 }
 0x5fc   :  { %p1411_p7 = scmp.ne.s32.totalorder %s1725_s9, %s1410_s22  ;;  %p1414_p8 = scmp.lt.u32.totalorder %s1410_s22, %s1725_s9 }
 0x5fe   :  { %p1416_p9 = pnand %p1414_p8, %p1411_p7 }
 0x600   :  { %1419 = shalt.err (!%p1416_p9)
}
 0x601   :  { %882 = dma.vmem_to_hbm [thread:$0]  %s880_s13, 64, %s1725_s9, [#allocation4]  }
 0x602   :  { %1430 = dma.done.wait [#allocation4], 64  }
 0x603   :  { %1431 = vsyncadd [#allocation4], 4294967232 }
 0x604   :  { %1432 = dma.done.wait [#allocation18], 256  }
 0x605   :  { %1433 = vsyncadd [#allocation18], 4294967040 }
 0x606   :  { %899 = vsyncpa [#allocation3], 1 }
 0x607   :  { %900 = vsyncpa [#allocation6], 1 }
 0x608   :  { %901 = vsyncpa [#allocation9], 1 }
 0x609   :  { %902 = vsyncpa [#allocation12], 1 }
 0x60a   :  { %903 = vsyncpa [#allocation15], 1 }
 0x60b   :  { %904 = vsyncpa [#allocation4], 1 }
 0x60c   :  { %905 = vsyncpa [#allocation18], 1 }

// kernel: tpu_custom_call.1
= control target key start
LH: loop header
LB: loop body
LE: loop exit
PB: predicated region body
PF: predicated region fallthrough
CT: control target
= control target key end

     0   :  { %16 = vsyncpa [#allocation3], 0  ;;  %s1716_s0 = inlined_call_operand.hbm [shape: bf16[8,128], index: 0, kind: input, shape index: {}]   ;;  %s1717_s1 = inlined_call_operand.hbm [shape: bf16[8,128], index: 1, kind: input, shape index: {}]   ;;  %s1718_s2 = inlined_call_operand.hbm [shape: bf16[128,128], index: 2, kind: input, shape index: {}]   ;;  %s1719_s3 = inlined_call_operand.hbm [shape: bf16[128,128], index: 3, kind: input, shape index: {}]   ;;  %s1720_s4 = inlined_call_operand.hbm [shape: bf16[128,256], index: 4, kind: input, shape index: {}]   ;;  %s1721_s5 = inlined_call_operand.hbm [shape: bf16[128,128], index: 5, kind: input, shape index: {}]   ;;  %s1722_s6 = inlined_call_operand.hbm [shape: bf16[128,128], index: 6, kind: input, shape index: {}]   ;;  %s1723_s7 = inlined_call_operand.hbm [shape: bf16[128,128], index: 7, kind: input, shape index: {}]   ;;  %s1724_s8 = inlined_call_operand.vmem [shape: f32[1,896], index: 8, kind: input, shape index: {}]   ;;  %s1725_s9 = inlined_call_operand.hbm [shape: bf16[8,128], index: 9, kind: output, shape index: {0}]   ;;  %s1726_s10 = inlined_call_operand.hbm [shape: f32[8,256], index: 10, kind: output, shape index: {1}]  }
   0x1   :  { %17 = vsyncpa [#allocation6], 0 }
   0x2   :  { %18 = vsyncpa [#allocation9], 0 }
   0x3   :  { %19 = vsyncpa [#allocation12], 0 }
   0x4   :  { %20 = vsyncpa [#allocation15], 0 }
   0x5   :  { %21 = vsyncpa [#allocation4], 0 }
   0x6   :  { %22 = vsyncpa [#allocation18], 0  ;;  %s1434_s13 = smov [#allocation5]   ;;  %s1200_s17 = scalar_lea.hbm %s1717_s1, 64 }
   0x7   :  { %s39_s14 = sshll.u32 %s1434_s13, 4  ;;  %p1201_p0 = scmp.ne.s32.totalorder %s1717_s1, %s1200_s17  ;;  %s40_s14 = int_to_ptr.vmem [resolvable:$true] %s39_s14 }
   0x8   :  { %p1204_p1 = scmp.lt.u32.totalorder %s1200_s17, %s1717_s1 }
   0xa   :  { %p1206_p2 = pnand %p1204_p1, %p1201_p0 }
   0xc   :  { %1209 = shalt.err (!%p1206_p2)
}
   0xd   :  { %s1210_s22 = scalar_lea.vmem %s40_s14, 64  ;;  %p1215_p4 = scmp.lt.s32.totalorder %s40_s14, %s40_s14 }
   0xe   :  { %p1211_p3 = scmp.ne.s32.totalorder %s40_s14, %s1210_s22  ;;  %p1216_p5 = scmp.lt.s32.totalorder %s1210_s22, %s1210_s22 }
  0x10   :  { %p1217_p6 = por %p1216_p5, %p1215_p4 }
  0x12   :  { %p1218_p7 = pnand %p1217_p6, %p1211_p3 }
  0x14   :  { %1221 = shalt.err (!%p1218_p7)
}
  0x15   :  { %42 = dma.hbm_to_vmem [thread:$0]  %s1717_s1, 64, %s40_s14, [#allocation6]  }
  0x16   :  { %s1435_s25 = smov [#allocation8]   ;;  %s1436_s27 = smov [#allocation11]  }
  0x17   :  { %s60_s26 = sshll.u32 %s1435_s25, 4  ;;  %s84_s28 = sshll.u32 %s1436_s27, 4  ;;  %s61_s26 = int_to_ptr.vmem [resolvable:$true] %s60_s26  ;;  %s85_s28 = int_to_ptr.vmem [resolvable:$true] %s84_s28 }
  0x18   :  { %s1222_s11 = scalar_lea.hbm %s1719_s3, 1024 }
  0x19   :  { %p1223_p8 = scmp.ne.s32.totalorder %s1719_s3, %s1222_s11  ;;  %p1226_p9 = scmp.lt.u32.totalorder %s1222_s11, %s1719_s3 }
  0x1b   :  { %p1228_p10 = pnand %p1226_p9, %p1223_p8 }
  0x1d   :  { %1231 = shalt.err (!%p1228_p10)
}
  0x1e   :  { %s1232_s1 = scalar_lea.vmem %s61_s26, 1024  ;;  %p1237_p12 = scmp.lt.s32.totalorder %s61_s26, %s61_s26 }
  0x1f   :  { %p1233_p11 = scmp.ne.s32.totalorder %s61_s26, %s1232_s1  ;;  %p1238_p13 = scmp.lt.s32.totalorder %s1232_s1, %s1232_s1 }
  0x21   :  { %p1239_p0 = por %p1238_p13, %p1237_p12 }
  0x23   :  { %p1240_p1 = pnand %p1239_p0, %p1233_p11 }
  0x25   :  { %1243 = shalt.err (!%p1240_p1)
}
  0x26   :  { %s1437_s14 = smov 64   ;;  %s1438_s17 = smov 4  }
  0x27   :  { %66 = dma.hbm_to_vmem [thread:$0]  %s1719_s3, 1024, %s61_s26, [#allocation9], %s1437_s14, %s1437_s14, %s1438_s17  }
  0x28   :  { %s1244_s22 = scalar_lea.hbm %s1721_s5, 1024 }
  0x29   :  { %p1245_p2 = scmp.ne.s32.totalorder %s1721_s5, %s1244_s22  ;;  %p1248_p3 = scmp.lt.u32.totalorder %s1244_s22, %s1721_s5 }
  0x2b   :  { %p1250_p4 = pnand %p1248_p3, %p1245_p2 }
  0x2d   :  { %1253 = shalt.err (!%p1250_p4)
}
  0x2e   :  { %s1254_s29 = scalar_lea.vmem %s85_s28, 1024  ;;  %p1259_p6 = scmp.lt.s32.totalorder %s85_s28, %s85_s28 }
  0x2f   :  { %p1255_p5 = scmp.ne.s32.totalorder %s85_s28, %s1254_s29  ;;  %p1260_p7 = scmp.lt.s32.totalorder %s1254_s29, %s1254_s29 }
  0x31   :  { %p1261_p8 = por %p1260_p7, %p1259_p6 }
  0x33   :  { %p1262_p9 = pnand %p1261_p8, %p1255_p5 }
  0x35   :  { %1265 = shalt.err (!%p1262_p9)
}
  0x36   :  { %90 = dma.hbm_to_vmem [thread:$0]  %s1721_s5, 1024, %s85_s28, [#allocation12], %s1437_s14, %s1437_s14, %s1438_s17  }
  0x37   :  { %s1439_s30 = smov [#allocation2]   ;;  %s1440_s12 = smov [#allocation7]  }
  0x38   :  { %s29_s11 = sshll.u32 %s1439_s30, 4  ;;  %s48_s13 = sshll.u32 %s1440_s12, 4  ;;  %s30_s11 = int_to_ptr.vmem [resolvable:$true] %s29_s11  ;;  %s49_s13 = int_to_ptr.vmem [resolvable:$true] %s48_s13 }
  0x39   :  { %s1266_s1 = scalar_lea.hbm %s1716_s0, 64 }
  0x3a   :  { %p1267_p10 = scmp.ne.s32.totalorder %s1716_s0, %s1266_s1  ;;  %p1270_p11 = scmp.lt.u32.totalorder %s1266_s1, %s1716_s0 }
  0x3c   :  { %p1272_p12 = pnand %p1270_p11, %p1267_p10 }
  0x3e   :  { %1275 = shalt.err (!%p1272_p12)
}
  0x3f   :  { %s1276_s5 = scalar_lea.vmem %s30_s11, 64  ;;  %p1281_p0 = scmp.lt.s32.totalorder %s30_s11, %s30_s11 }
  0x40   :  { %p1277_p13 = scmp.ne.s32.totalorder %s30_s11, %s1276_s5  ;;  %p1282_p1 = scmp.lt.s32.totalorder %s1276_s5, %s1276_s5 }
  0x42   :  { %p1283_p2 = por %p1282_p1, %p1281_p0 }
  0x44   :  { %p1284_p3 = pnand %p1283_p2, %p1277_p13 }
  0x46   :  { %1287 = shalt.err (!%p1284_p3)
}
  0x47   :  { %32 = dma.hbm_to_vmem [thread:$0]  %s1716_s0, 64, %s30_s11, [#allocation3]  }
  0x48   :  { %s1288_s25 = scalar_lea.hbm %s1718_s2, 1024 }
  0x49   :  { %p1289_p4 = scmp.ne.s32.totalorder %s1718_s2, %s1288_s25  ;;  %p1292_p5 = scmp.lt.u32.totalorder %s1288_s25, %s1718_s2 }
  0x4b   :  { %p1294_p6 = pnand %p1292_p5, %p1289_p4 }
  0x4d   :  { %1297 = shalt.err (!%p1294_p6)
}
  0x4e   :  { %s1298_s30 = scalar_lea.vmem %s49_s13, 1024  ;;  %p1303_p8 = scmp.lt.s32.totalorder %s49_s13, %s49_s13 }
  0x4f   :  { %p1299_p7 = scmp.ne.s32.totalorder %s49_s13, %s1298_s30  ;;  %p1304_p9 = scmp.lt.s32.totalorder %s1298_s30, %s1298_s30 }
  0x51   :  { %p1305_p10 = por %p1304_p9, %p1303_p8 }
  0x53   :  { %p1306_p11 = pnand %p1305_p10, %p1299_p7 }
  0x55   :  { %1309 = shalt.err (!%p1306_p11)
}
  0x56   :  { %54 = dma.hbm_to_vmem [thread:$0]  %s1718_s2, 1024, %s49_s13, [#allocation6], %s1437_s14, %s1437_s14, %s1438_s17  }
  0x57   :  { %s1441_s12 = smov [#allocation10]   ;;  %s1310_s18 = scalar_lea.hbm %s1720_s4, 2048 }
  0x58   :  { %s72_s15 = sshll.u32 %s1441_s12, 4  ;;  %p1311_p12 = scmp.ne.s32.totalorder %s1720_s4, %s1310_s18  ;;  %s73_s15 = int_to_ptr.vmem [resolvable:$true] %s72_s15 }
  0x59   :  { %p1314_p13 = scmp.lt.u32.totalorder %s1310_s18, %s1720_s4 }
  0x5b   :  { %p1316_p0 = pnand %p1314_p13, %p1311_p12 }
  0x5d   :  { %1319 = shalt.err (!%p1316_p0)
}
  0x5e   :  { %s1320_s28 = scalar_lea.vmem %s73_s15, 2048  ;;  %p1325_p2 = scmp.lt.s32.totalorder %s73_s15, %s73_s15 }
  0x5f   :  { %p1321_p1 = scmp.ne.s32.totalorder %s73_s15, %s1320_s28  ;;  %p1326_p3 = scmp.lt.s32.totalorder %s1320_s28, %s1320_s28 }
  0x61   :  { %p1327_p4 = por %p1326_p3, %p1325_p2 }
  0x63   :  { %p1328_p5 = pnand %p1327_p4, %p1321_p1 }
  0x65   :  { %1331 = shalt.err (!%p1328_p5)
}
  0x66   :  { %s1442_s2 = smov 128   ;;  %s1443_s13 = smov 8  }
  0x67   :  { %78 = dma.hbm_to_vmem [thread:$0]  %s1720_s4, 2048, %s73_s15, [#allocation9], %s1442_s2, %s1442_s2, %s1443_s13  }
  0x68   :  { %s1444_s24 = smov [#allocation13]   ;;  %s1445_s27 = smov [#allocation14]  }
  0x69   :  { %s96_s25 = sshll.u32 %s1444_s24, 4  ;;  %s108_s29 = sshll.u32 %s1445_s27, 4  ;;  %s97_s25 = int_to_ptr.vmem [resolvable:$true] %s96_s25  ;;  %s1587_s29 = int_to_ptr.vmem [resolvable:$true] %s108_s29 }
  0x6a   :  { %s1332_s30 = scalar_lea.hbm %s1722_s6, 1024 }
  0x6b   :  { %p1333_p6 = scmp.ne.s32.totalorder %s1722_s6, %s1332_s30  ;;  %p1336_p7 = scmp.lt.u32.totalorder %s1332_s30, %s1722_s6 }
  0x6d   :  { %p1338_p8 = pnand %p1336_p7, %p1333_p6 }
  0x6f   :  { %1341 = shalt.err (!%p1338_p8)
}
  0x70   :  { %s1342_s4 = scalar_lea.vmem %s97_s25, 1024  ;;  %p1347_p10 = scmp.lt.s32.totalorder %s97_s25, %s97_s25 }
  0x71   :  { %p1343_p9 = scmp.ne.s32.totalorder %s97_s25, %s1342_s4  ;;  %p1348_p11 = scmp.lt.s32.totalorder %s1342_s4, %s1342_s4 }
  0x73   :  { %p1349_p12 = por %p1348_p11, %p1347_p10 }
  0x75   :  { %p1350_p13 = pnand %p1349_p12, %p1343_p9 }
  0x77   :  { %1353 = shalt.err (!%p1350_p13)
}
  0x78   :  { %102 = dma.hbm_to_vmem [thread:$0]  %s1722_s6, 1024, %s97_s25, [#allocation12], %s1437_s14, %s1437_s14, %s1438_s17  }
  0x79   :  { %s1354_s20 = scalar_lea.hbm %s1723_s7, 1024 }
  0x7a   :  { %p1355_p0 = scmp.ne.s32.totalorder %s1723_s7, %s1354_s20  ;;  %p1358_p1 = scmp.lt.u32.totalorder %s1354_s20, %s1723_s7 }
  0x7c   :  { %p1360_p2 = pnand %p1358_p1, %p1355_p0 }
  0x7e   :  { %1363 = shalt.err (!%p1360_p2)
}
  0x7f   :  { %s1364_s13 = scalar_lea.vmem %s1587_s29, 1024  ;;  %p1369_p4 = scmp.lt.s32.totalorder %s1587_s29, %s1587_s29 }
  0x80   :  { %p1365_p3 = scmp.ne.s32.totalorder %s1587_s29, %s1364_s13  ;;  %p1370_p5 = scmp.lt.s32.totalorder %s1364_s13, %s1364_s13 }
  0x82   :  { %p1371_p6 = por %p1370_p5, %p1369_p4 }
  0x84   :  { %p1372_p7 = pnand %p1371_p6, %p1365_p3 }
  0x86   :  { %1375 = shalt.err (!%p1372_p7)
}
  0x87   :  { %114 = dma.hbm_to_vmem [thread:$0]  %s1723_s7, 1024, %s1587_s29, [#allocation15], %s1437_s14, %s1437_s14, %s1438_s17  }
  0x88   :  { %1420 = dma.done.wait [#allocation3], 64  }
  0x89   :  { %1421 = vsyncadd [#allocation3], 4294967232 }
  0x8a   :  { %1422 = dma.done.wait [#allocation6], 1088  }
  0x8b   :  { %1423 = vsyncadd [#allocation6], 4294966208 }
  0x8c   :  { %1424 = dma.done.wait [#allocation9], 3072  }
  0x8d   :  { %1425 = vsyncadd [#allocation9], 4294964224 }
  0x8e   :  { %1426 = dma.done.wait [#allocation12], 2048  }
  0x8f   :  { %1427 = vsyncadd [#allocation12], 4294965248 }
  0x90   :  { %1428 = dma.done.wait [#allocation15], 1024  }
  0x91   :  { %1429 = vsyncadd [#allocation15], 4294966272  ;;  %v1446_v0 = vmov 0.0   ;;  %vm1447_vm0 = vmmov 0   ;;  %v1130_v1 = vld [vmem:[#allocation7] sm:$0xff]   ;;  %v1131_v2 = vld [vmem:[#allocation7 + $0x8] sm:$0xff]  }
  0x92   :  { %1013 = vmatprep.subr.bf16.mxu0 %v1446_v0  ;;  %1029 = vmatprep.mubr.msk.bf16.mxu0 %vm1447_vm0, %v1446_v0  ;;  %v1132_v3 = vld [vmem:[#allocation7 + $0x10] sm:$0xff]   ;;  %v1138_v4 = vld [vmem:[#allocation8] sm:$0xff]   ;;  %v1133_v5 = vld [vmem:[#allocation7 + $0x18] sm:$0xff]   ;;  %v1448_v42 = vmov 0   ;;  %s1449_s30 = smov [#allocation17]  }
  0x93   :  { %1033 = vmatprep.subr.bf16.mxu1 %v1446_v0  ;;  %1049 = vmatprep.mubr.msk.bf16.mxu1 %vm1447_vm0, %v1446_v0  ;;  %v1139_v6 = vld [vmem:[#allocation8 + $0x8] sm:$0xff]   ;;  %v1134_v7 = vld [vmem:[#allocation7 + $0x20] sm:$0xff]   ;;  %v1140_v8 = vld [vmem:[#allocation8 + $0x10] sm:$0xff]   ;;  %s889_s0 = sshll.u32 %s1449_s30, 4  ;;  %s890_s0 = int_to_ptr.vmem [resolvable:$true] %s889_s0 }
  0x94   :  { %1014 = vmatpush3.bf16.msra.mxu0 %v1130_v1  ;;  %1034 = vmatpush3.bf16.msra.mxu1 %v1138_v4  ;;  %v1135_v9 = vld [vmem:[#allocation7 + $0x28] sm:$0xff]   ;;  %v1141_v10 = vld [vmem:[#allocation8 + $0x18] sm:$0xff]   ;;  %v1136_v11 = vld [vmem:[#allocation7 + $0x30] sm:$0xff]   ;;  %s1376_s11 = scalar_lea.vmem %s890_s0, 256  ;;  %p1381_p9 = scmp.lt.s32.totalorder %s890_s0, %s890_s0 }
  0x95   :  { %1015 = vmatprep.subr.bf16.mxu0 %v1446_v0  ;;  %1035 = vmatprep.subr.bf16.mxu1 %v1446_v0  ;;  %v1142_v12 = vld [vmem:[#allocation8 + $0x20] sm:$0xff]   ;;  %v1137_v13 = vld [vmem:[#allocation7 + $0x38] sm:$0xff]   ;;  %v1143_v14 = vld [vmem:[#allocation8 + $0x28] sm:$0xff]   ;;  %p1377_p8 = scmp.ne.s32.totalorder %s890_s0, %s1376_s11  ;;  %p1382_p10 = scmp.lt.s32.totalorder %s1376_s11, %s1376_s11 }
  0x96   :  { %v142_v15 = vld [vmem:[#allocation2] sm:$0xf]  ;;  %v1144_v16 = vld [vmem:[#allocation8 + $0x30] sm:$0xff]   ;;  %v1146_v18 = vld [vmem:[#allocation10] ss:$8 sps:$4 sm:$0xff]  }
  0x97   :  { %v1145_v17 = vld [vmem:[#allocation8 + $0x38] sm:$0xff]   ;;  %v1148_v19 = vld [vmem:[#allocation10 + $0x4] ss:$8 sps:$4 sm:$0xff]   ;;  %v1152_v23 = vld [vmem:[#allocation10 + $0x20] ss:$8 sps:$4 sm:$0xff]   ;;  %p1383_p11 = por %p1382_p10, %p1381_p9 }
  0x98   :  { %1016 = vmatpush3.bf16.msra.mxu0 %v1131_v2  ;;  %1036 = vmatpush3.bf16.msra.mxu1 %v1139_v6  ;;  %v1151_v20 = vld [vmem:[#allocation10 + $0x14] ss:$8 sps:$4 sm:$0xff]   ;;  %v1149_v21 = vld [vmem:[#allocation10 + $0x10] ss:$8 sps:$4 sm:$0xff]   ;;  %v1154_v22 = vld [vmem:[#allocation10 + $0x24] ss:$8 sps:$4 sm:$0xff]   ;;  %v387_v2 = vlaneseq }
  0x99   :  { %1017 = vmatprep.subr.bf16.mxu0 %v1446_v0  ;;  %1037 = vmatprep.subr.bf16.mxu1 %v1446_v0  ;;  %v1157_v24 = vld [vmem:[#allocation10 + $0x34] ss:$8 sps:$4 sm:$0xff]   ;;  %v1155_v25 = vld [vmem:[#allocation10 + $0x30] ss:$8 sps:$4 sm:$0xff]   ;;  %v1160_v26 = vld [vmem:[#allocation10 + $0x44] ss:$8 sps:$4 sm:$0xff]   ;;  %p1384_p12 = pnand %p1383_p11, %p1377_p8 }
  0x9a   :  { %v1158_v27 = vld [vmem:[#allocation10 + $0x40] ss:$8 sps:$4 sm:$0xff]   ;;  %v1163_v28 = vld [vmem:[#allocation10 + $0x54] ss:$8 sps:$4 sm:$0xff]   ;;  %v1161_v29 = vld [vmem:[#allocation10 + $0x50] ss:$8 sps:$4 sm:$0xff]  }
  0x9b   :  { %v1166_v30 = vld [vmem:[#allocation10 + $0x64] ss:$8 sps:$4 sm:$0xff]   ;;  %v1164_v31 = vld [vmem:[#allocation10 + $0x60] ss:$8 sps:$4 sm:$0xff]   ;;  %v906_v32 = vld [vmem:[%s1724_s8] ss:$0 sm:$0xff] }
  0x9c   :  { %1018 = vmatpush3.bf16.msra.mxu0 %v1132_v3  ;;  %1038 = vmatpush3.bf16.msra.mxu1 %v1140_v8  ;;  %v1169_v40 = vld [vmem:[#allocation10 + $0x74] ss:$8 sps:$4 sm:$0xff]   ;;  %v1167_v41 = vld [vmem:[#allocation10 + $0x70] ss:$8 sps:$4 sm:$0xff]   ;;  %v1170_v43 = vld [vmem:[#allocation11] sm:$0xff]   ;;  %v388_v3 = vshrl.u32 %v387_v2, 7 }
  0x9d   :  { %1019 = vmatprep.subr.bf16.mxu0 %v1446_v0  ;;  %1039 = vmatprep.subr.bf16.mxu1 %v1446_v0  ;;  %v1171_v44 = vld [vmem:[#allocation11 + $0x8] sm:$0xff]   ;;  %v915_v45 = vld [vmem:[%s1724_s8 + $0x1] ss:$0 sm:$0xff]  ;;  %v1173_v54 = vld [vmem:[#allocation11 + $0x18] sm:$0xff]  }
  0x9e   :  { %v1172_v53 = vld [vmem:[#allocation11 + $0x10] sm:$0xff]   ;;  %v1174_v55 = vld [vmem:[#allocation11 + $0x20] sm:$0xff]   ;;  %v1175_v56 = vld [vmem:[#allocation11 + $0x28] sm:$0xff]   ;;  %v389_v4 = vsub.s32 0, %v388_v3  ;;  %v393_v6 = vsub.s32 1, %v388_v3 }
  0x9f   :  { %v1176_v57 = vld [vmem:[#allocation11 + $0x30] sm:$0xff]   ;;  %v1177_v58 = vld [vmem:[#allocation11 + $0x38] sm:$0xff]   ;;  %v1178_v59 = vld [vmem:[#allocation13] sm:$0xff]  }
  0xa0   :  { %1020 = vmatpush3.bf16.msra.mxu0 %v1133_v5  ;;  %1040 = vmatpush3.bf16.msra.mxu1 %v1141_v10  ;;  %v1179_v60 = vld [vmem:[#allocation13 + $0x8] sm:$0xff]   ;;  %v1180_v61 = vld [vmem:[#allocation13 + $0x10] sm:$0xff]   ;;  %v1181_v62 = vld [vmem:[#allocation13 + $0x18] sm:$0xff]  }
  0xa1   :  { %1021 = vmatprep.subr.bf16.mxu0 %v1446_v0  ;;  %1041 = vmatprep.subr.bf16.mxu1 %v1446_v0  ;;  %v1182_v63 = vld [vmem:[#allocation13 + $0x20] sm:$0xff]   ;;  %v1183_v1 = vld [vmem:[#allocation13 + $0x28] sm:$0xff]   ;;  %v385_v5 = vld [vmem:[%s1724_s8 + $0x2] sm:$0x3] }
  0xa2   :  { %v394_v8 = vrot.slane %v385_v5, %v393_v6 }
  0xa4   :  { %1022 = vmatpush3.bf16.msra.mxu0 %v1134_v7  ;;  %1042 = vmatpush3.bf16.msra.mxu1 %v1142_v12  ;;  %v390_v7 = vrot.slane %v385_v5, %v389_v4 }
  0xa5   :  { %1023 = vmatprep.subr.bf16.mxu0 %v1446_v0  ;;  %1043 = vmatprep.subr.bf16.mxu1 %v1446_v0 }
  0xa8   :  { %1024 = vmatpush3.bf16.msra.mxu0 %v1135_v9  ;;  %1044 = vmatpush3.bf16.msra.mxu1 %v1143_v14 }
  0xa9   :  { %1025 = vmatprep.subr.bf16.mxu0 %v1446_v0  ;;  %1045 = vmatprep.subr.bf16.mxu1 %v1446_v0 }
  0xac   :  { %1026 = vmatpush3.bf16.msra.mxu0 %v1136_v11  ;;  %1046 = vmatpush3.bf16.msra.mxu1 %v1144_v16 }
  0xad   :  { %1027 = vmatprep.subr.bf16.mxu0 %v1446_v0  ;;  %1047 = vmatprep.subr.bf16.mxu1 %v1446_v0 }
  0xb0   :  { %1028 = vmatpush3.bf16.msra.mxu0 %v1137_v13  ;;  %1048 = vmatpush3.bf16.msra.mxu1 %v1145_v17  ;;  %v521_v17 = vld [vmem:[#allocation5] sm:$0xf] }
  0xb1   :  { %1053 = vmatprep.subr.bf16.mxu1 %v1446_v0  ;;  %477 = vmatprep.subr.bf16.mxu0 %v1148_v19 }
  0xb3   :  { %1030 = vmatmul.mubr.bf16.vlgmr.msra.gmra.mrb[0].mxu0 %v142_v15 }
  0xb4   :  { %478 = vmatpush1.bf16.msra.mxu0 %v1146_v18  ;;  %509 = vmatprep.mubr.bf16.mxu0 %v1448_v42  ;;  %v522_v18 = vunpack.c.l.bf16 %v521_v17 }
  0xb5   :  { %479 = vmatprep.subr.bf16.mxu0 %v1151_v20 }
  0xb8   :  { %480 = vmatpush1.bf16.msra.mxu0 %v1149_v21 }
  0xb9   :  { %481 = vmatprep.subr.bf16.mxu0 %v1154_v22 }
  0xbc   :  { %482 = vmatpush1.bf16.msra.mxu0 %v1152_v23  ;;  %v1184_v23 = vld [vmem:[#allocation13 + $0x30] sm:$0xff]  }
  0xbd   :  { %483 = vmatprep.subr.bf16.mxu0 %v1157_v24  ;;  %v1185_v24 = vld [vmem:[#allocation13 + $0x38] sm:$0xff]  }
  0xc0   :  { %484 = vmatpush1.bf16.msra.mxu0 %v1155_v25  ;;  %v1186_v25 = vld [vmem:[#allocation14] sm:$0xff]  }
  0xc1   :  { %485 = vmatprep.subr.bf16.mxu0 %v1160_v26  ;;  %v1187_v26 = vld [vmem:[#allocation14 + $0x8] sm:$0xff]  }
  0xc4   :  { %486 = vmatpush1.bf16.msra.mxu0 %v1158_v27  ;;  %v1188_v27 = vld [vmem:[#allocation14 + $0x10] sm:$0xff]  }
  0xc5   :  { %487 = vmatprep.subr.bf16.mxu0 %v1163_v28  ;;  %v1189_v28 = vld [vmem:[#allocation14 + $0x18] sm:$0xff]  }
  0xc8   :  { %488 = vmatpush1.bf16.msra.mxu0 %v1161_v29  ;;  %v1190_v29 = vld [vmem:[#allocation14 + $0x20] sm:$0xff]  }
  0xc9   :  { %489 = vmatprep.subr.bf16.mxu0 %v1166_v30  ;;  %v1191_v30 = vld [vmem:[#allocation14 + $0x28] sm:$0xff]  }
  0xcc   :  { %490 = vmatpush1.bf16.msra.mxu0 %v1164_v31  ;;  %v940_v31 = vld [vmem:[%s1724_s8 + $0x4] ss:$0 sm:$0xff] }
  0xcd   :  { %491 = vmatprep.subr.bf16.mxu0 %v1169_v40  ;;  %v1193_v40 = vld [vmem:[#allocation14 + $0x38] sm:$0xff]  }
  0xd0   :  { %492 = vmatpush1.bf16.msra.mxu0 %v1167_v41  ;;  %v949_v41 = vld [vmem:[%s1724_s8 + $0x5] ss:$0 sm:$0xff] }
  0xd1   :  { %1073 = vmatprep.subr.bf16.mxu0 %v1446_v0 }
 0x186   :  { %v248_v33 = vpop.f32.mrb[0].mxu0 }
 0x187   :  { %v249_v34 = vadd.f32 %v906_v32, %v248_v33  ;;  %v1031_v35 = vpop.f32.mrb[1].mxu0 }
 0x188   :  { %v251_v36 = vpop.f32.mrb[2].mxu0 }
 0x189   :  { %v254_v37 = vmax.f32 %v249_v34, 0.0  ;;  %v1032_v38 = vpop.f32.mrb[3].mxu0 }
 0x18b   :  { %v255_v39 = vpack.c.bf16 %v254_v37, %v254_v37 }
 0x18d   :  { %1050 = vmatmul.mubr.bf16.vlgmr.msra.gmra.mrb[0].mxu1 %v255_v39  ;;  %v1192_v39 = vld [vmem:[#allocation14 + $0x30] sm:$0xff]  }
 0x18e   :  { %1069 = vmatprep.mubr.msk.bf16.mxu1 %vm1447_vm0, %v1446_v0  ;;  %1054 = vmatpush3.bf16.msra.mxu1 %v1170_v43 }
 0x18f   :  { %1055 = vmatprep.subr.bf16.mxu1 %v1446_v0 }
 0x192   :  { %1056 = vmatpush3.bf16.msra.mxu1 %v1171_v44 }
 0x193   :  { %1057 = vmatprep.subr.bf16.mxu1 %v1446_v0 }
 0x196   :  { %1058 = vmatpush3.bf16.msra.mxu1 %v1172_v53 }
 0x197   :  { %1059 = vmatprep.subr.bf16.mxu1 %v1446_v0 }
 0x19a   :  { %1060 = vmatpush3.bf16.msra.mxu1 %v1173_v54 }
 0x19b   :  { %1061 = vmatprep.subr.bf16.mxu1 %v1446_v0 }
 0x19e   :  { %1062 = vmatpush3.bf16.msra.mxu1 %v1174_v55 }
 0x19f   :  { %1063 = vmatprep.subr.bf16.mxu1 %v1446_v0 }
 0x1a2   :  { %1064 = vmatpush3.bf16.msra.mxu1 %v1175_v56 }
 0x1a3   :  { %1065 = vmatprep.subr.bf16.mxu1 %v1446_v0 }
 0x1a6   :  { %1066 = vmatpush3.bf16.msra.mxu1 %v1176_v57 }
 0x1a7   :  { %1067 = vmatprep.subr.bf16.mxu1 %v1446_v0 }
 0x1aa   :  { %1068 = vmatpush3.bf16.msra.mxu1 %v1177_v58 }
 0x1ab   :  { %1093 = vmatprep.subr.bf16.mxu1 %v1446_v0 }
 0x260   :  { %v361_v46 = vpop.f32.mrb[0].mxu1 }
 0x261   :  { %v362_v47 = vadd.f32 %v915_v45, %v361_v46  ;;  %v1051_v48 = vpop.f32.mrb[1].mxu1 }
 0x262   :  { %v364_v49 = vpop.f32.mrb[2].mxu1 }
 0x263   :  { %v367_v50 = vmax.f32 %v362_v47, 0.0  ;;  %v1052_v51 = vpop.f32.mrb[3].mxu1 }
 0x265   :  { %v368_v52 = vpack.c.bf16 %v367_v50, %v367_v50 }
 0x267   :  { %510 = vmatmul.mubr.bf16.vlgmr.msra.gmra.mrb[4].mxu0 %v368_v52 }
 0x268   :  { %1089 = vmatprep.mubr.msk.bf16.mxu0 %vm1447_vm0, %v1446_v0  ;;  %1074 = vmatpush3.bf16.msra.mxu0 %v1178_v59 }
 0x269   :  { %1075 = vmatprep.subr.bf16.mxu0 %v1446_v0 }
 0x26c   :  { %1076 = vmatpush3.bf16.msra.mxu0 %v1179_v60 }
 0x26d   :  { %1077 = vmatprep.subr.bf16.mxu0 %v1446_v0 }
 0x270   :  { %1078 = vmatpush3.bf16.msra.mxu0 %v1180_v61 }
 0x271   :  { %1079 = vmatprep.subr.bf16.mxu0 %v1446_v0 }
 0x274   :  { %1080 = vmatpush3.bf16.msra.mxu0 %v1181_v62 }
 0x275   :  { %1081 = vmatprep.subr.bf16.mxu0 %v1446_v0 }
 0x278   :  { %1082 = vmatpush3.bf16.msra.mxu0 %v1182_v63 }
 0x279   :  { %1083 = vmatprep.subr.bf16.mxu0 %v1446_v0 }
 0x27c   :  { %1084 = vmatpush3.bf16.msra.mxu0 %v1183_v1 }
 0x27d   :  { %1085 = vmatprep.subr.bf16.mxu0 %v1446_v0 }
 0x280   :  { %1086 = vmatpush3.bf16.msra.mxu0 %v1184_v23 }
 0x281   :  { %1087 = vmatprep.subr.bf16.mxu0 %v1446_v0 }
 0x284   :  { %1088 = vmatpush3.bf16.msra.mxu0 %v1185_v24 }
 0x33a   :  { %v511_v9 = vpop.f32.mrb[4].mxu0 }
 0x33b   :  { %v512_v10 = vadd.f32 %v511_v9, %v390_v7  ;;  %v513_v11 = vpop.f32.mrb[5].mxu0 }
 0x33c   :  { %v514_v12 = vadd.f32 %v513_v11, %v394_v8  ;;  %v515_v13 = vpop.f32.mrb[6].mxu0 }
 0x33d   :  { %871 = vst [vmem:[#allocation17] sm:$0xff] %v512_v10  ;;  %v516_v14 = vpop.f32.mrb[7].mxu0 }
 0x33e   :  { %v518_v15 = vmul.f32 0.5, %v514_v12  ;;  %872 = vst [vmem:[#allocation17 + $0x8] sm:$0xff] %v514_v12 }
 0x340   :  { %v519_v16 = vmul.f32 1.442695, %v518_v15 }
 0x342   :  { %1194 = vpow2.f32 %v519_v16 }
 0x34c   :  { %v1195_v19 = vpop.eup %1194 }
 0x34d   :  { %v523_v20 = vmul.f32 %v1195_v19, %v522_v18 }
 0x34f   :  { %v524_v21 = vadd.f32 %v523_v20, %v512_v10 }
 0x351   :  { %v525_v22 = vpack.c.bf16 %v524_v21, %v524_v21 }
 0x353   :  { %1070 = vmatmul.mubr.bf16.vlgmr.msra.gmra.mrb[4].mxu1 %v525_v22 }
 0x354   :  { %1109 = vmatprep.mubr.msk.bf16.mxu1 %vm1447_vm0, %v1446_v0  ;;  %1094 = vmatpush3.bf16.msra.mxu1 %v1186_v25 }
 0x355   :  { %1095 = vmatprep.subr.bf16.mxu1 %v1446_v0 }
 0x358   :  { %1096 = vmatpush3.bf16.msra.mxu1 %v1187_v26 }
 0x359   :  { %1097 = vmatprep.subr.bf16.mxu1 %v1446_v0 }
 0x35c   :  { %1098 = vmatpush3.bf16.msra.mxu1 %v1188_v27 }
 0x35d   :  { %1099 = vmatprep.subr.bf16.mxu1 %v1446_v0 }
 0x360   :  { %1100 = vmatpush3.bf16.msra.mxu1 %v1189_v28 }
 0x361   :  { %1101 = vmatprep.subr.bf16.mxu1 %v1446_v0 }
 0x364   :  { %1102 = vmatpush3.bf16.msra.mxu1 %v1190_v29 }
 0x365   :  { %1103 = vmatprep.subr.bf16.mxu1 %v1446_v0 }
 0x368   :  { %1104 = vmatpush3.bf16.msra.mxu1 %v1191_v30 }
 0x369   :  { %1105 = vmatprep.subr.bf16.mxu1 %v1446_v0 }
 0x36c   :  { %1106 = vmatpush3.bf16.msra.mxu1 %v1192_v39 }
 0x36d   :  { %1107 = vmatprep.subr.bf16.mxu1 %v1446_v0 }
 0x370   :  { %1108 = vmatpush3.bf16.msra.mxu1 %v1193_v40 }
 0x426   :  { %v631_v32 = vpop.f32.mrb[4].mxu1 }
 0x427   :  { %v632_v33 = vadd.f32 %v940_v31, %v631_v32  ;;  %v1071_v34 = vpop.f32.mrb[5].mxu1 }
 0x428   :  { %v634_v35 = vpop.f32.mrb[6].mxu1 }
 0x429   :  { %v637_v36 = vmax.f32 %v632_v33, 0.0  ;;  %v1072_v37 = vpop.f32.mrb[7].mxu1 }
 0x42b   :  { %v638_v38 = vpack.c.bf16 %v637_v36, %v637_v36 }
 0x42d   :  { %1090 = vmatmul.mubr.bf16.vlgmr.msra.gmra.mrb[8].mxu0 %v638_v38 }
 0x500   :  { %v744_v42 = vpop.f32.mrb[8].mxu0 }
 0x501   :  { %v745_v43 = vadd.f32 %v949_v41, %v744_v42  ;;  %v1091_v44 = vpop.f32.mrb[9].mxu0 }
 0x502   :  { %v747_v45 = vpop.f32.mrb[10].mxu0 }
 0x503   :  { %v750_v46 = vmax.f32 %v745_v43, 0.0  ;;  %v1092_v47 = vpop.f32.mrb[11].mxu0 }
 0x505   :  { %v751_v48 = vpack.c.bf16 %v750_v46, %v750_v46 }
 0x507   :  { %1110 = vmatmul.mubr.bf16.vlgmr.msra.gmra.mrb[8].mxu1 %v751_v48 }
 0x508   :  { %1387 = shalt.err (!%p1384_p12)
}
 0x509   :  { %s1388_s4 = scalar_lea.hbm %s1726_s10, 256 }
 0x50a   :  { %p1389_p13 = scmp.ne.s32.totalorder %s1726_s10, %s1388_s4  ;;  %p1392_p0 = scmp.lt.u32.totalorder %s1388_s4, %s1726_s10 }
 0x50c   :  { %p1394_p1 = pnand %p1392_p0, %p1389_p13 }
 0x50e   :  { %1397 = shalt.err (!%p1394_p1)
}
 0x50f   :  { %892 = dma.vmem_to_hbm [thread:$0]  %s890_s0, 256, %s1726_s10, [#allocation18]   ;;  %v958_v0 = vld [vmem:[%s1724_s8 + $0x6] ss:$0 sm:$0xff] }
 0x510   :  { %s1450_s2 = smov [#allocation16]  }
 0x511   :  { %s879_s13 = sshll.u32 %s1450_s2, 4  ;;  %s880_s13 = int_to_ptr.vmem [resolvable:$true] %s879_s13 }
 0x512   :  { %s1398_s10 = scalar_lea.vmem %s880_s13, 64  ;;  %p1403_p3 = scmp.lt.s32.totalorder %s880_s13, %s880_s13 }
 0x513   :  { %p1399_p2 = scmp.ne.s32.totalorder %s880_s13, %s1398_s10  ;;  %p1404_p4 = scmp.lt.s32.totalorder %s1398_s10, %s1398_s10 }
 0x515   :  { %p1405_p5 = por %p1404_p4, %p1403_p3 }
 0x517   :  { %p1406_p6 = pnand %p1405_p5, %p1399_p2 }
 0x5da   :  { %v857_v49 = vpop.f32.mrb[8].mxu1 }
 0x5db   :  { %v858_v50 = vadd.f32 %v958_v0, %v857_v49  ;;  %v1111_v51 = vpop.f32.mrb[9].mxu1 }
 0x5dc   :  { %v860_v52 = vpop.f32.mrb[10].mxu1 }
 0x5dd   :  { %v967_v53 = vmul.f32 -1.442695, %v858_v50  ;;  %v1112_v54 = vpop.f32.mrb[11].mxu1 }
 0x5df   :  { %1196 = vpow2.f32 %v967_v53 }
 0x5e9   :  { %v1197_v55 = vpop.eup %1196 }
 0x5ea   :  { %v866_v56 = vadd.f32 1.0, %v1197_v55 }
 0x5ec   :  { %1198 = vrcp.f32 %v866_v56 }
 0x5f6   :  { %v1199_v57 = vpop.eup %1198 }
 0x5f7   :  { %v869_v58 = vpack.c.bf16 %v1199_v57, %v1199_v57 }
 0x5f9   :  { %870 = vst [vmem:[#allocation16] sm:$0xf] %v869_v58 }
 0x5fa   :  { %1409 = shalt.err (!%p1406_p6)
}
 0x5fb   :  { %s1410_s22 = scalar_lea.hbm %s1725_s9, 64 }
 0x5fc   :  { %p1411_p7 = scmp.ne.s32.totalorder %s1725_s9, %s1410_s22  ;;  %p1414_p8 = scmp.lt.u32.totalorder %s1410_s22, %s1725_s9 }
 0x5fe   :  { %p1416_p9 = pnand %p1414_p8, %p1411_p7 }
 0x600   :  { %1419 = shalt.err (!%p1416_p9)
}
 0x601   :  { %882 = dma.vmem_to_hbm [thread:$0]  %s880_s13, 64, %s1725_s9, [#allocation4]  }
 0x602   :  { %1430 = dma.done.wait [#allocation4], 64  }
 0x603   :  { %1431 = vsyncadd [#allocation4], 4294967232 }
 0x604   :  { %1432 = dma.done.wait [#allocation18], 256  }
 0x605   :  { %1433 = vsyncadd [#allocation18], 4294967040 }
 0x606   :  { %899 = vsyncpa [#allocation3], 1 }
 0x607   :  { %900 = vsyncpa [#allocation6], 1 }
 0x608   :  { %901 = vsyncpa [#allocation9], 1 }
 0x609   :  { %902 = vsyncpa [#allocation12], 1 }
 0x60a   :  { %903 = vsyncpa [#allocation15], 1 }
 0x60b   :  { %904 = vsyncpa [#allocation4], 1 }
 0x60c   :  { %905 = vsyncpa [#allocation18], 1 }

</bundles_post_ra>
